<compile_context>
chip_gen: v6e
topology: v6e:2x2x1
jax: 0.10.0
libtpu: 0.0.40
codegen_flags: <defaults>
</compile_context>

<pallas_src>
import functools

import numpy as np
import jax
import jax.numpy as jnp
from jax import lax
from jax.experimental import pallas as pl
from jax.experimental.pallas import tpu as pltpu


# ----------------------------- configuration --------------------------------
EMBED_SIZE = 32
HEADS = 4
SEQ_LEN = 8            # module='temporal'  =>  head_dim == seq_len
N_BATCH = 2
NUM_LAYERS = 2
FORWARD_EXPANSION = 4
BN_EPS = 1e-5
LEAKY_SLOPE = 0.01

# ------------------- packed parameter buffer layout (rows x 128, f32) --------
_PACK_ROWS = 200
_R_WQKV, _C_WQKV = 0, 0      # (E, 3E)   = (32, 96)   Wq|Wk*s|Wv  (in,out) layout
_R_WF,   _C_WF   = 0, 96     # (E, E)    = (32, 32)   SelfAttention.fc_out
_R_W1,   _C_W1   = 32, 0     # (E, FE)   = (32, 128)  feed_forward[0]
_R_W2,   _C_W2   = 64, 0     # (FE, E)   = (128, 32)  feed_forward[2]
_R_EREP, _C_EREP = 64, 32    # (N*H*L,E) = (64, 32)   rel-pos E replicated over batch
_R_WO,   _C_WO   = 64, 64    # (E, E)    = (32, 32)   Encoder.fc_out
_R_BN,   _C_BN   = 64, 96    # (R, 4)    = (32, 4)    g1 | beta1 | g2 | beta2 (permuted)
_R_BIAS          = 192       # row 192: bqkv(0:96) | bf(96:128)
                             # row 193: bff1(0:128)
                             # row 194: bff2(0:32) | bo(32:64)


# ----------------------------- kernel helpers --------------------------------
def _batchnorm_rows(y2d, gamma, beta, n_batch, rows):
    """torch.nn.BatchNorm1d (training-mode batch stats, biased variance) applied to
    a (n_batch*rows, feat) matrix whose channel index is the row index within each
    batch block.  Uses the moments trick: var = E[x^2] - mean^2."""
    feat = y2d.shape[1]
    inv_count = jnp.float32(1.0 / (n_batch * feat))
    row_sum = jnp.sum(y2d, axis=1, keepdims=True)            # (NR, 1)
    row_sq = jnp.sum(y2d * y2d, axis=1, keepdims=True)        # (NR, 1)  (parallel)
    ch_sum = row_sum[0:rows]
    ch_sq = row_sq[0:rows]
    for n in range(1, n_batch):
        ch_sum = ch_sum + row_sum[n * rows:(n + 1) * rows]
        ch_sq = ch_sq + row_sq[n * rows:(n + 1) * rows]
    mean_c = ch_sum * inv_count                                # (R, 1)
    var_c = ch_sq * inv_count - mean_c * mean_c
    inv_std_c = lax.rsqrt(var_c + jnp.float32(BN_EPS))
    scale_c = gamma * inv_std_c
    shift_c = beta - mean_c * scale_c
    scale_full = jnp.concatenate([scale_c] * n_batch, axis=0)
    shift_full = jnp.concatenate([shift_c] * n_batch, axis=0)
    return y2d * scale_full + shift_full


# ----------------------------- fused Encoder kernel ---------------------------
def _encoder_kernel(x_ref, p_ref, o_ref, *, n_batch, seq_len, heads,
                    embed_size, hidden):
    N, L, H, E, FE = n_batch, seq_len, heads, embed_size, hidden
    R = L * H
    NR = N * R
    B = N * H

    xp = x_ref[...]                                   # (NR, E), rows ordered (n, h, l)

    # ---- fused QKV projection (1/sqrt(E) pre-folded into K weights/bias) ----
    wqkv = p_ref[_R_WQKV:_R_WQKV + E, _C_WQKV:_C_WQKV + 3 * E]
    bqkv = p_ref[_R_BIAS:_R_BIAS + 1, 0:3 * E]
    qkv = jnp.dot(xp, wqkv, preferred_element_type=jnp.float32) + bqkv   # (NR, 3E)
    qb = qkv[:, 0:E].reshape(B, L, E)
    kb = qkv[:, E:2 * E].reshape(B, L, E)             # already scaled by E**-0.5
    vb = qkv[:, 2 * E:3 * E].reshape(B, L, E)

    # relative-position embedding, pre-replicated over batch (no in-kernel copy)
    eb = p_ref[_R_EREP:_R_EREP + B * L, _C_EREP:_C_EREP + E].reshape(B, L, E)

    # all heads / batches in single batched MXU contractions
    qk = jnp.einsum('bqd,bkd->bqk', qb, kb, preferred_element_type=jnp.float32)
    qe = jnp.einsum('bqd,bkd->bqk', qb, eb, preferred_element_type=jnp.float32)

    q_idx = lax.broadcasted_iota(jnp.int32, (B, L, L), 1)
    k_idx = lax.broadcasted_iota(jnp.int32, (B, L, L), 2)
    lower = k_idx <= q_idx

    # torch: masked_fill(triu(1)==0, -1e20) then softmax(qk / sqrt(E))
    # (the scale is already folded into kb; the mask constant only needs exp()->0)
    logits = jnp.where(lower, jnp.float32(-1e20), qk)
    mx = jnp.max(logits, axis=-1, keepdims=True)
    num = jnp.exp(logits - mx)
    attn = num / jnp.sum(num, axis=-1, keepdims=True)   # exact div keeps 1e-4 fidelity

    # relative-position skew:  S[b,q,k] = qe[b,q,k+L-1-q] for k<=q, else 0
    # (depends only on qe -> overlaps with the softmax EUP/XLU chain above)
    j_target = k_idx + (L - 1) - q_idx
    s = jnp.zeros((B, L, L), jnp.float32)
    for j in range(L):
        sel = jnp.logical_and(j_target == j, lower)
        s = s + jnp.where(sel, qe[:, :, j:j + 1], jnp.float32(0.0))
    attn = attn + s

    z = jnp.einsum('bqk,bkd->bqd', attn, vb, preferred_element_type=jnp.float32)
    z2d = z.reshape(NR, E)                            # rows ordered (n, h, l)

    # SelfAttention.fc_out
    wf = p_ref[_R_WF:_R_WF + E, _C_WF:_C_WF + E]
    bf = p_ref[_R_BIAS:_R_BIAS + 1, 96:96 + E]
    att_out = jnp.dot(z2d, wf, preferred_element_type=jnp.float32) + bf

    # BN channel params (already permuted to (h, l) order host-side)
    g1 = p_ref[_R_BN:_R_BN + R, _C_BN + 0:_C_BN + 1]
    bt1 = p_ref[_R_BN:_R_BN + R, _C_BN + 1:_C_BN + 2]
    g2 = p_ref[_R_BN:_R_BN + R, _C_BN + 2:_C_BN + 3]
    bt2 = p_ref[_R_BN:_R_BN + R, _C_BN + 3:_C_BN + 4]

    # EncoderLayer (only the last layer contributes to Encoder's output)
    x1 = _batchnorm_rows(att_out + xp, g1, bt1, N, R)

    w1 = p_ref[_R_W1:_R_W1 + E, _C_W1:_C_W1 + FE]
    b1 = p_ref[_R_BIAS + 1:_R_BIAS + 2, 0:FE]
    h1 = jnp.dot(x1, w1, preferred_element_type=jnp.float32) + b1
    h1 = jnp.where(h1 > 0, h1, jnp.float32(LEAKY_SLOPE) * h1)     # LeakyReLU

    w2 = p_ref[_R_W2:_R_W2 + FE, _C_W2:_C_W2 + E]
    b2 = p_ref[_R_BIAS + 2:_R_BIAS + 3, 0:E]
    ff = jnp.dot(h1, w2, preferred_element_type=jnp.float32) + b2

    x2 = _batchnorm_rows(ff + x1, g2, bt2, N, R)

    # Encoder.fc_out
    wo = p_ref[_R_WO:_R_WO + E, _C_WO:_C_WO + E]
    bo = p_ref[_R_BIAS + 2:_R_BIAS + 3, E:2 * E]
    o_ref[...] = jnp.dot(x2, wo, preferred_element_type=jnp.float32) + bo


# ----------------------------- wrapper ---------------------------------------
def _pack_params(lp, wo, bo, n_batch):
    """Pack all per-layer parameters into a single (200, 128) f32 buffer."""
    E, H, L = EMBED_SIZE, HEADS, SEQ_LEN
    R = L * H
    FE = FORWARD_EXPANSION * E
    s = jnp.float32(E ** -0.5)
    # BN channels: new row order within a batch block is (h, l); original is (l, h)
    perm = np.arange(R).reshape(L, H).T.reshape(-1)    # new idx -> old idx

    wqkv_t = jnp.concatenate([lp["Wq"].T, (lp["Wk"] * s).T, lp["Wv"].T], axis=1)
    bqkv = jnp.concatenate([lp["bq"], lp["bk"] * s, lp["bv"]], axis=0)
    e_rep = jnp.concatenate([lp["E"].reshape(R, E)] * n_batch, axis=0)     # (N*H*L, E)
    bn = jnp.stack([lp["g1"][perm], lp["beta1"][perm],
                    lp["g2"][perm], lp["beta2"][perm]], axis=1)            # (R, 4)

    p = jnp.zeros((_PACK_ROWS, 128), jnp.float32)
    p = p.at[_R_WQKV:_R_WQKV + E, _C_WQKV:_C_WQKV + 3 * E].set(wqkv_t)
    p = p.at[_R_WF:_R_WF + E, _C_WF:_C_WF + E].set(lp["Wf"].T)
    p = p.at[_R_W1:_R_W1 + E, _C_W1:_C_W1 + FE].set(lp["W1"].T)
    p = p.at[_R_W2:_R_W2 + FE, _C_W2:_C_W2 + E].set(lp["W2"].T)
    p = p.at[_R_EREP:_R_EREP + n_batch * R, _C_EREP:_C_EREP + E].set(e_rep)
    p = p.at[_R_WO:_R_WO + E, _C_WO:_C_WO + E].set(wo.T)
    p = p.at[_R_BN:_R_BN + R, _C_BN:_C_BN + 4].set(bn)
    p = p.at[_R_BIAS, 0:3 * E].set(bqkv)
    p = p.at[_R_BIAS, 96:96 + E].set(lp["bf"])
    p = p.at[_R_BIAS + 1, 0:FE].set(lp["bff1"])
    p = p.at[_R_BIAS + 2, 0:E].set(lp["bff2"])
    p = p.at[_R_BIAS + 2, E:2 * E].set(bo)
    return p


def encoder_forward(x, params):
    """Pallas implementation of Encoder.forward (module='temporal', rel_emb=True)."""
    N, R, E = x.shape
    L, H = SEQ_LEN, HEADS
    FE = FORWARD_EXPANSION * E
    assert R == L * H and E == EMBED_SIZE
    NR = N * R

    lp = params["layers"][-1]   # see NOTE: only the last layer affects the output
    packed = _pack_params(lp, params["Wo"], params["bo"], N)

    # pre-permute rows (n, l, h) -> (n, h, l) in the wrapper (tiny XLA transpose)
    xp = x.reshape(N, L, H, E).transpose(0, 2, 1, 3).reshape(NR, E)

    kern = functools.partial(_encoder_kernel, n_batch=N, seq_len=L, heads=H,
                             embed_size=E, hidden=FE)
    out2d = pl.pallas_call(
        kern,
        out_shape=jax.ShapeDtypeStruct((NR, E), jnp.float32),
        grid=(1,),
        in_specs=[pl.BlockSpec((NR, E), lambda i: (0, 0)),
                  pl.BlockSpec((_PACK_ROWS, 128), lambda i: (0, 0))],
        out_specs=pl.BlockSpec((NR, E), lambda i: (0, 0)),
        compiler_params=pltpu.CompilerParams(
            dimension_semantics=("arbitrary",)),
    )(xp, packed)

    # inverse-permute rows (n, h, l) -> (n, l, h)
    return out2d.reshape(N, H, L, E).transpose(0, 2, 1, 3).reshape(N, R, E)


# ----------------------------- pure-JAX reference ----------------------------
_HI = jax.lax.Precision.HIGHEST


def _bn1d_ref(y, gamma, beta):
    mean = jnp.mean(y, axis=(0, 2), keepdims=True)
    var = jnp.mean(jnp.square(y - mean), axis=(0, 2), keepdims=True)
    yhat = (y - mean) / jnp.sqrt(var + BN_EPS)
    return yhat * gamma.reshape(1, -1, 1) + beta.reshape(1, -1, 1)


def _self_attention_ref(x, p):
    N = x.shape[0]
    L, H, E = SEQ_LEN, HEADS, EMBED_SIZE
    mm = lambda a, b: jnp.matmul(a, b, precision=_HI)
    values = mm(x, p["Wv"].T) + p["bv"]
    keys = mm(x, p["Wk"].T) + p["bk"]
    queries = mm(x, p["Wq"].T) + p["bq"]
    values = values.reshape(N, L, H, E)
    keys = keys.reshape(N, L, H, E)
    queries = queries.reshape(N, L, H, E)

    QE = jnp.einsum("nhqd,hjd->nhqj", queries.transpose(0, 2, 1, 3), p["E"],
                    precision=_HI)
    mask = jnp.flip(jnp.triu(jnp.ones((L, L), jnp.float32), 1), axis=1)
    QE = jnp.where(mask == 1, 0.0, QE)
    padded = jnp.pad(QE, ((0, 0), (0, 0), (0, 0), (1, 0)))
    sh = padded.shape
    S = padded.reshape(sh[0], sh[1], sh[3], sh[2])[:, :, 1:, :]

    qk = jnp.einsum("nqhd,nkhd->nhqk", queries, keys, precision=_HI)
    tri = jnp.triu(jnp.ones((1, L, L), jnp.float32), 1)
    qk = jnp.where(tri == 0, jnp.float32(-1e20), qk)
    attention = jax.nn.softmax(qk / (E ** 0.5), axis=3) + S

    z = jnp.einsum("nhql,nlhd->nqhd", attention, values,
                   precision=_HI).reshape(N, L * H, E)
    return mm(z, p["Wf"].T) + p["bf"]


def _encoder_layer_ref(x, p):
    mm = lambda a, b: jnp.matmul(a, b, precision=_HI)
    a = _self_attention_ref(x, p)
    x1 = _bn1d_ref(a + x, p["g1"], p["beta1"])
    h = mm(x1, p["W1"].T) + p["bff1"]
    h = jnp.where(h > 0, h, LEAKY_SLOPE * h)
    ff = mm(h, p["W2"].T) + p["bff2"]
    return _bn1d_ref(ff + x1, p["g2"], p["beta2"])


def _encoder_ref(x, params):
    out = x
    for p in params["layers"]:
        out = _encoder_layer_ref(x, p)   # PyTorch loop feeds the SAME x to every layer
    return jnp.matmul(out, params["Wo"].T, precision=_HI) + params["bo"]


# ----------------------------- main ------------------------------------------
if __name__ == "__main__":
    key = jax.random.PRNGKey(0)
    E, H, L, N = EMBED_SIZE, HEADS, SEQ_LEN, N_BATCH
    R = L * H
    FE = FORWARD_EXPANSION * E

    def make_layer(k):
        ks = jax.random.split(k, 18)
        nrm = lambda kk, shp: 0.05 * jax.random.normal(kk, shp, jnp.float32)
        return {
            "Wq": nrm(ks[0], (E, E)), "bq": nrm(ks[1], (E,)),
            "Wk": nrm(ks[2], (E, E)), "bk": nrm(ks[3], (E,)),
            "Wv": nrm(ks[4], (E, E)), "bv": nrm(ks[5], (E,)),
            "E": 0.1 * jax.random.normal(ks[6], (H, L, E), jnp.float32),
            "Wf": nrm(ks[7], (E, E)), "bf": nrm(ks[8], (E,)),
            "g1": 1.0 + nrm(ks[9], (R,)), "beta1": nrm(ks[10], (R,)),
            "W1": nrm(ks[11], (FE, E)), "bff1": nrm(ks[12], (FE,)),
            "W2": nrm(ks[13], (E, FE)), "bff2": nrm(ks[14], (E,)),
            "g2": 1.0 + nrm(ks[15], (R,)), "beta2": nrm(ks[16], (R,)),
        }

    keys = jax.random.split(key, NUM_LAYERS + 3)
    params = {
        "layers": [make_layer(keys[i]) for i in range(NUM_LAYERS)],
        "Wo": 0.05 * jax.random.normal(keys[NUM_LAYERS], (E, E), jnp.float32),
        "bo": 0.05 * jax.random.normal(keys[NUM_LAYERS + 1], (E,), jnp.float32),
    }
    x = jax.random.normal(keys[NUM_LAYERS + 2], (N, R, E), jnp.float32)

    out = jax.jit(encoder_forward)(x, params)
    out = jax.block_until_ready(out)

    ref = _encoder_ref(x, params)
    assert out.shape == (N, R, E), out.shape
    max_err = float(jnp.max(jnp.abs(out - ref)))
    assert jnp.allclose(out, ref, rtol=2e-4, atol=2e-4), max_err

    print("KERNEL_OK")
</pallas_src>

<mosaic_0001>
module attributes {stable_mosaic.version = 11 : i64} {
  func.func @_encoder_kernel(%arg0: i32, %arg1: memref<64x32xf32, #tpu.memory_space<vmem>>, %arg2: memref<200x128xf32, #tpu.memory_space<vmem>>, %arg3: memref<64x32xf32, #tpu.memory_space<vmem>>) attributes {dimension_semantics = [#tpu.dimension_semantics<arbitrary>], iteration_bounds = array<i64: 1>, scalar_prefetch = 0 : i64, scratch_operands = 0 : i64, tpu.core_type = #tpu.core_type<tc>, window_params = [{pipeline_mode = #tpu.pipeline_mode<synchronous>, transform_indices = @transform_0, window_bounds = array<i64: 64, 32>}, {pipeline_mode = #tpu.pipeline_mode<synchronous>, transform_indices = @transform_1, window_bounds = array<i64: 200, 128>}, {pipeline_mode = #tpu.pipeline_mode<synchronous>, transform_indices = @transform_2, window_bounds = array<i64: 64, 32>}]} {
    %c0 = arith.constant 0 : index
    %c0_0 = arith.constant 0 : index
    %0 = vector.load %arg1[%c0, %c0_0] : memref<64x32xf32, #tpu.memory_space<vmem>>, vector<64x32xf32>
    %c0_1 = arith.constant 0 : index
    %c0_2 = arith.constant 0 : index
    %1 = vector.load %arg2[%c0_1, %c0_2] : memref<200x128xf32, #tpu.memory_space<vmem>>, vector<32x96xf32>
    %c192 = arith.constant 192 : index
    %c0_3 = arith.constant 0 : index
    %2 = vector.load %arg2[%c192, %c0_3] : memref<200x128xf32, #tpu.memory_space<vmem>>, vector<1x96xf32>
    %cst = arith.constant dense<0.000000e+00> : vector<64x96xf32>
    %3 = tpu.matmul %0, %1, %cst {dimension_numbers = #tpu.dot_dimension_numbers<[1], [0], [0], [1], [0, 0, 1, 1], [], []>} : vector<64x32xf32>, vector<32x96xf32>, vector<64x96xf32> -> vector<64x96xf32>
    %4 = vector.broadcast %2 : vector<1x96xf32> to vector<64x96xf32>
    %5 = arith.addf %3, %4 : vector<64x96xf32>
    %6 = vector.extract_strided_slice %5 {offsets = [0, 0], sizes = [64, 32], strides = [1, 1]} : vector<64x96xf32> to vector<64x32xf32>
    %7 = vector.shape_cast %6 : vector<64x32xf32> to vector<8x8x32xf32>
    %8 = vector.extract_strided_slice %5 {offsets = [0, 32], sizes = [64, 32], strides = [1, 1]} : vector<64x96xf32> to vector<64x32xf32>
    %9 = vector.shape_cast %8 : vector<64x32xf32> to vector<8x8x32xf32>
    %10 = vector.extract_strided_slice %5 {offsets = [0, 64], sizes = [64, 32], strides = [1, 1]} : vector<64x96xf32> to vector<64x32xf32>
    %11 = vector.shape_cast %10 : vector<64x32xf32> to vector<8x8x32xf32>
    %c64 = arith.constant 64 : index
    %c32 = arith.constant 32 : index
    %12 = vector.load %arg2[%c64, %c32] : memref<200x128xf32, #tpu.memory_space<vmem>>, vector<64x32xf32>
    %13 = vector.shape_cast %12 : vector<64x32xf32> to vector<8x8x32xf32>
    "tpu.trace_start"() <{level = 10 : i32, message = "bqd,bkd->bqk"}> : () -> ()
    %cst_4 = arith.constant dense<0.000000e+00> : vector<8x8x8xf32>
    %14 = tpu.matmul %7, %9, %cst_4 {dimension_numbers = #tpu.dot_dimension_numbers<[2], [2], [1], [1], [0, 0, 0, 1, 1, 1], [0], [0]>} : vector<8x8x32xf32>, vector<8x8x32xf32>, vector<8x8x8xf32> -> vector<8x8x8xf32>
    %cst_5 = arith.constant dense<0.000000e+00> : vector<8x8x8xf32>
    %15 = tpu.matmul %7, %13, %cst_5 {dimension_numbers = #tpu.dot_dimension_numbers<[2], [2], [1], [1], [0, 0, 0, 1, 1, 1], [0], [0]>} : vector<8x8x32xf32>, vector<8x8x32xf32>, vector<8x8x8xf32> -> vector<8x8x8xf32>
    "tpu.trace_stop"() : () -> ()
    %16 = tpu.iota {dimensions = array<i32: 1>} : vector<8x8x8xi32>
    %17 = tpu.iota {dimensions = array<i32: 2>} : vector<8x8x8xi32>
    %18 = arith.cmpi sle, %17, %16 : vector<8x8x8xi32>
    %cst_6 = arith.constant -1.000000e+20 : f32
    %19 = vector.broadcast %cst_6 : f32 to vector<8x8x8xf32>
    %20 = arith.select %18, %19, %14 : vector<8x8x8xi1>, vector<8x8x8xf32>
    %cst_7 = arith.constant dense<0xFF800000> : vector<8x8xf32>
    %21 = vector.multi_reduction <maximumf>, %20, %cst_7 [2] : vector<8x8x8xf32> to vector<8x8xf32>
    %22 = vector.shape_cast %21 : vector<8x8xf32> to vector<8x8x1xf32>
    %23 = vector.broadcast %22 : vector<8x8x1xf32> to vector<8x8x8xf32>
    %24 = arith.subf %20, %23 : vector<8x8x8xf32>
    %25 = math.exp %24 : vector<8x8x8xf32>
    %cst_8 = arith.constant dense<0.000000e+00> : vector<8x8xf32>
    %26 = vector.multi_reduction <add>, %25, %cst_8 [2] : vector<8x8x8xf32> to vector<8x8xf32>
    %27 = vector.shape_cast %26 : vector<8x8xf32> to vector<8x8x1xf32>
    %28 = vector.broadcast %27 : vector<8x8x1xf32> to vector<8x8x8xf32>
    %29 = arith.divf %25, %28 : vector<8x8x8xf32>
    %c7_i32 = arith.constant 7 : i32
    %30 = vector.broadcast %c7_i32 : i32 to vector<8x8x8xi32>
    %31 = arith.addi %17, %30 : vector<8x8x8xi32>
    %32 = arith.subi %31, %16 : vector<8x8x8xi32>
    %cst_9 = arith.constant 0.000000e+00 : f32
    %33 = vector.broadcast %cst_9 : f32 to vector<8x8x8xf32>
    %c0_i32 = arith.constant 0 : i32
    %34 = vector.broadcast %c0_i32 : i32 to vector<8x8x8xi32>
    %35 = arith.cmpi eq, %32, %34 : vector<8x8x8xi32>
    %36 = arith.andi %35, %18 : vector<8x8x8xi1>
    %37 = vector.extract_strided_slice %15 {offsets = [0, 0, 0], sizes = [8, 8, 1], strides = [1, 1, 1]} : vector<8x8x8xf32> to vector<8x8x1xf32>
    %cst_10 = arith.constant 0.000000e+00 : f32
    %38 = vector.shape_cast %37 : vector<8x8x1xf32> to vector<8x8x1xf32>
    %39 = vector.broadcast %38 : vector<8x8x1xf32> to vector<8x8x8xf32>
    %40 = vector.broadcast %cst_10 : f32 to vector<8x8x8xf32>
    %41 = arith.select %36, %39, %40 : vector<8x8x8xi1>, vector<8x8x8xf32>
    %42 = arith.addf %33, %41 : vector<8x8x8xf32>
    %c1_i32 = arith.constant 1 : i32
    %43 = vector.broadcast %c1_i32 : i32 to vector<8x8x8xi32>
    %44 = arith.cmpi eq, %32, %43 : vector<8x8x8xi32>
    %45 = arith.andi %44, %18 : vector<8x8x8xi1>
    %46 = vector.extract_strided_slice %15 {offsets = [0, 0, 1], sizes = [8, 8, 1], strides = [1, 1, 1]} : vector<8x8x8xf32> to vector<8x8x1xf32>
    %cst_11 = arith.constant 0.000000e+00 : f32
    %47 = vector.shape_cast %46 : vector<8x8x1xf32> to vector<8x8x1xf32>
    %48 = vector.broadcast %47 : vector<8x8x1xf32> to vector<8x8x8xf32>
    %49 = vector.broadcast %cst_11 : f32 to vector<8x8x8xf32>
    %50 = arith.select %45, %48, %49 : vector<8x8x8xi1>, vector<8x8x8xf32>
    %51 = arith.addf %42, %50 : vector<8x8x8xf32>
    %c2_i32 = arith.constant 2 : i32
    %52 = vector.broadcast %c2_i32 : i32 to vector<8x8x8xi32>
    %53 = arith.cmpi eq, %32, %52 : vector<8x8x8xi32>
    %54 = arith.andi %53, %18 : vector<8x8x8xi1>
    %55 = vector.extract_strided_slice %15 {offsets = [0, 0, 2], sizes = [8, 8, 1], strides = [1, 1, 1]} : vector<8x8x8xf32> to vector<8x8x1xf32>
    %cst_12 = arith.constant 0.000000e+00 : f32
    %56 = vector.shape_cast %55 : vector<8x8x1xf32> to vector<8x8x1xf32>
    %57 = vector.broadcast %56 : vector<8x8x1xf32> to vector<8x8x8xf32>
    %58 = vector.broadcast %cst_12 : f32 to vector<8x8x8xf32>
    %59 = arith.select %54, %57, %58 : vector<8x8x8xi1>, vector<8x8x8xf32>
    %60 = arith.addf %51, %59 : vector<8x8x8xf32>
    %c3_i32 = arith.constant 3 : i32
    %61 = vector.broadcast %c3_i32 : i32 to vector<8x8x8xi32>
    %62 = arith.cmpi eq, %32, %61 : vector<8x8x8xi32>
    %63 = arith.andi %62, %18 : vector<8x8x8xi1>
    %64 = vector.extract_strided_slice %15 {offsets = [0, 0, 3], sizes = [8, 8, 1], strides = [1, 1, 1]} : vector<8x8x8xf32> to vector<8x8x1xf32>
    %cst_13 = arith.constant 0.000000e+00 : f32
    %65 = vector.shape_cast %64 : vector<8x8x1xf32> to vector<8x8x1xf32>
    %66 = vector.broadcast %65 : vector<8x8x1xf32> to vector<8x8x8xf32>
    %67 = vector.broadcast %cst_13 : f32 to vector<8x8x8xf32>
    %68 = arith.select %63, %66, %67 : vector<8x8x8xi1>, vector<8x8x8xf32>
    %69 = arith.addf %60, %68 : vector<8x8x8xf32>
    %c4_i32 = arith.constant 4 : i32
    %70 = vector.broadcast %c4_i32 : i32 to vector<8x8x8xi32>
    %71 = arith.cmpi eq, %32, %70 : vector<8x8x8xi32>
    %72 = arith.andi %71, %18 : vector<8x8x8xi1>
    %73 = vector.extract_strided_slice %15 {offsets = [0, 0, 4], sizes = [8, 8, 1], strides = [1, 1, 1]} : vector<8x8x8xf32> to vector<8x8x1xf32>
    %cst_14 = arith.constant 0.000000e+00 : f32
    %74 = vector.shape_cast %73 : vector<8x8x1xf32> to vector<8x8x1xf32>
    %75 = vector.broadcast %74 : vector<8x8x1xf32> to vector<8x8x8xf32>
    %76 = vector.broadcast %cst_14 : f32 to vector<8x8x8xf32>
    %77 = arith.select %72, %75, %76 : vector<8x8x8xi1>, vector<8x8x8xf32>
    %78 = arith.addf %69, %77 : vector<8x8x8xf32>
    %c5_i32 = arith.constant 5 : i32
    %79 = vector.broadcast %c5_i32 : i32 to vector<8x8x8xi32>
    %80 = arith.cmpi eq, %32, %79 : vector<8x8x8xi32>
    %81 = arith.andi %80, %18 : vector<8x8x8xi1>
    %82 = vector.extract_strided_slice %15 {offsets = [0, 0, 5], sizes = [8, 8, 1], strides = [1, 1, 1]} : vector<8x8x8xf32> to vector<8x8x1xf32>
    %cst_15 = arith.constant 0.000000e+00 : f32
    %83 = vector.shape_cast %82 : vector<8x8x1xf32> to vector<8x8x1xf32>
    %84 = vector.broadcast %83 : vector<8x8x1xf32> to vector<8x8x8xf32>
    %85 = vector.broadcast %cst_15 : f32 to vector<8x8x8xf32>
    %86 = arith.select %81, %84, %85 : vector<8x8x8xi1>, vector<8x8x8xf32>
    %87 = arith.addf %78, %86 : vector<8x8x8xf32>
    %c6_i32 = arith.constant 6 : i32
    %88 = vector.broadcast %c6_i32 : i32 to vector<8x8x8xi32>
    %89 = arith.cmpi eq, %32, %88 : vector<8x8x8xi32>
    %90 = arith.andi %89, %18 : vector<8x8x8xi1>
    %91 = vector.extract_strided_slice %15 {offsets = [0, 0, 6], sizes = [8, 8, 1], strides = [1, 1, 1]} : vector<8x8x8xf32> to vector<8x8x1xf32>
    %cst_16 = arith.constant 0.000000e+00 : f32
    %92 = vector.shape_cast %91 : vector<8x8x1xf32> to vector<8x8x1xf32>
    %93 = vector.broadcast %92 : vector<8x8x1xf32> to vector<8x8x8xf32>
    %94 = vector.broadcast %cst_16 : f32 to vector<8x8x8xf32>
    %95 = arith.select %90, %93, %94 : vector<8x8x8xi1>, vector<8x8x8xf32>
    %96 = arith.addf %87, %95 : vector<8x8x8xf32>
    %c7_i32_17 = arith.constant 7 : i32
    %97 = vector.broadcast %c7_i32_17 : i32 to vector<8x8x8xi32>
    %98 = arith.cmpi eq, %32, %97 : vector<8x8x8xi32>
    %99 = arith.andi %98, %18 : vector<8x8x8xi1>
    %100 = vector.extract_strided_slice %15 {offsets = [0, 0, 7], sizes = [8, 8, 1], strides = [1, 1, 1]} : vector<8x8x8xf32> to vector<8x8x1xf32>
    %cst_18 = arith.constant 0.000000e+00 : f32
    %101 = vector.shape_cast %100 : vector<8x8x1xf32> to vector<8x8x1xf32>
    %102 = vector.broadcast %101 : vector<8x8x1xf32> to vector<8x8x8xf32>
    %103 = vector.broadcast %cst_18 : f32 to vector<8x8x8xf32>
    %104 = arith.select %99, %102, %103 : vector<8x8x8xi1>, vector<8x8x8xf32>
    %105 = arith.addf %96, %104 : vector<8x8x8xf32>
    %106 = arith.addf %29, %105 : vector<8x8x8xf32>
    "tpu.trace_start"() <{level = 10 : i32, message = "bqk,bkd->bqd"}> : () -> ()
    %cst_19 = arith.constant dense<0.000000e+00> : vector<8x8x32xf32>
    %107 = tpu.matmul %106, %11, %cst_19 {dimension_numbers = #tpu.dot_dimension_numbers<[2], [1], [1], [2], [0, 0, 0, 1, 1, 2], [0], [0]>} : vector<8x8x8xf32>, vector<8x8x32xf32>, vector<8x8x32xf32> -> vector<8x8x32xf32>
    "tpu.trace_stop"() : () -> ()
    %108 = vector.shape_cast %107 : vector<8x8x32xf32> to vector<64x32xf32>
    %c0_20 = arith.constant 0 : index
    %c96 = arith.constant 96 : index
    %109 = vector.load %arg2[%c0_20, %c96] : memref<200x128xf32, #tpu.memory_space<vmem>>, vector<32x32xf32>
    %c192_21 = arith.constant 192 : index
    %c96_22 = arith.constant 96 : index
    %110 = vector.load %arg2[%c192_21, %c96_22] : memref<200x128xf32, #tpu.memory_space<vmem>>, vector<1x32xf32>
    %cst_23 = arith.constant dense<0.000000e+00> : vector<64x32xf32>
    %111 = tpu.matmul %108, %109, %cst_23 {dimension_numbers = #tpu.dot_dimension_numbers<[1], [0], [0], [1], [0, 0, 1, 1], [], []>} : vector<64x32xf32>, vector<32x32xf32>, vector<64x32xf32> -> vector<64x32xf32>
    %112 = vector.broadcast %110 : vector<1x32xf32> to vector<64x32xf32>
    %113 = arith.addf %111, %112 : vector<64x32xf32>
    %c64_24 = arith.constant 64 : index
    %c96_25 = arith.constant 96 : index
    %114 = vector.load %arg2[%c64_24, %c96_25] : memref<200x128xf32, #tpu.memory_space<vmem>>, vector<32x1xf32>
    %c64_26 = arith.constant 64 : index
    %c97 = arith.constant 97 : index
    %115 = vector.load %arg2[%c64_26, %c97] : memref<200x128xf32, #tpu.memory_space<vmem>>, vector<32x1xf32>
    %c64_27 = arith.constant 64 : index
    %c98 = arith.constant 98 : index
    %116 = vector.load %arg2[%c64_27, %c98] : memref<200x128xf32, #tpu.memory_space<vmem>>, vector<32x1xf32>
    %c64_28 = arith.constant 64 : index
    %c99 = arith.constant 99 : index
    %117 = vector.load %arg2[%c64_28, %c99] : memref<200x128xf32, #tpu.memory_space<vmem>>, vector<32x1xf32>
    %118 = arith.addf %113, %0 : vector<64x32xf32>
    %cst_29 = arith.constant dense<0.000000e+00> : vector<64xf32>
    %119 = vector.multi_reduction <add>, %118, %cst_29 [1] : vector<64x32xf32> to vector<64xf32>
    %120 = vector.shape_cast %119 : vector<64xf32> to vector<64x1xf32>
    %121 = arith.mulf %118, %118 : vector<64x32xf32>
    %cst_30 = arith.constant dense<0.000000e+00> : vector<64xf32>
    %122 = vector.multi_reduction <add>, %121, %cst_30 [1] : vector<64x32xf32> to vector<64xf32>
    %123 = vector.shape_cast %122 : vector<64xf32> to vector<64x1xf32>
    %124 = vector.extract_strided_slice %120 {offsets = [0, 0], sizes = [32, 1], strides = [1, 1]} : vector<64x1xf32> to vector<32x1xf32>
    %125 = vector.extract_strided_slice %123 {offsets = [0, 0], sizes = [32, 1], strides = [1, 1]} : vector<64x1xf32> to vector<32x1xf32>
    %126 = vector.extract_strided_slice %120 {offsets = [32, 0], sizes = [32, 1], strides = [1, 1]} : vector<64x1xf32> to vector<32x1xf32>
    %127 = arith.addf %124, %126 : vector<32x1xf32>
    %128 = vector.extract_strided_slice %123 {offsets = [32, 0], sizes = [32, 1], strides = [1, 1]} : vector<64x1xf32> to vector<32x1xf32>
    %129 = arith.addf %125, %128 : vector<32x1xf32>
    %cst_31 = arith.constant 1.562500e-02 : f32
    %130 = vector.broadcast %cst_31 : f32 to vector<32x1xf32>
    %131 = arith.mulf %127, %130 : vector<32x1xf32>
    %cst_32 = arith.constant 1.562500e-02 : f32
    %132 = vector.broadcast %cst_32 : f32 to vector<32x1xf32>
    %133 = arith.mulf %129, %132 : vector<32x1xf32>
    %134 = arith.mulf %131, %131 : vector<32x1xf32>
    %135 = arith.subf %133, %134 : vector<32x1xf32>
    %cst_33 = arith.constant 9.99999974E-6 : f32
    %136 = vector.broadcast %cst_33 : f32 to vector<32x1xf32>
    %137 = arith.addf %135, %136 : vector<32x1xf32>
    %138 = math.rsqrt %137 : vector<32x1xf32>
    %139 = arith.mulf %114, %138 : vector<32x1xf32>
    %140 = arith.mulf %131, %139 : vector<32x1xf32>
    %141 = arith.subf %115, %140 : vector<32x1xf32>
    %142 = tpu.concatenate %139, %139 in 0 : vector<32x1xf32>, vector<32x1xf32> -> vector<64x1xf32>
    %143 = tpu.concatenate %141, %141 in 0 : vector<32x1xf32>, vector<32x1xf32> -> vector<64x1xf32>
    %144 = vector.broadcast %142 : vector<64x1xf32> to vector<64x32xf32>
    %145 = arith.mulf %118, %144 : vector<64x32xf32>
    %146 = vector.broadcast %143 : vector<64x1xf32> to vector<64x32xf32>
    %147 = arith.addf %145, %146 : vector<64x32xf32>
    %c32_34 = arith.constant 32 : index
    %c0_35 = arith.constant 0 : index
    %148 = vector.load %arg2[%c32_34, %c0_35] : memref<200x128xf32, #tpu.memory_space<vmem>>, vector<32x128xf32>
    %c193 = arith.constant 193 : index
    %c0_36 = arith.constant 0 : index
    %149 = vector.load %arg2[%c193, %c0_36] : memref<200x128xf32, #tpu.memory_space<vmem>>, vector<1x128xf32>
    %cst_37 = arith.constant dense<0.000000e+00> : vector<64x128xf32>
    %150 = tpu.matmul %147, %148, %cst_37 {dimension_numbers = #tpu.dot_dimension_numbers<[1], [0], [0], [1], [0, 0, 1, 1], [], []>} : vector<64x32xf32>, vector<32x128xf32>, vector<64x128xf32> -> vector<64x128xf32>
    %151 = vector.broadcast %149 : vector<1x128xf32> to vector<64x128xf32>
    %152 = arith.addf %150, %151 : vector<64x128xf32>
    %cst_38 = arith.constant 0.000000e+00 : f32
    %153 = vector.broadcast %cst_38 : f32 to vector<64x128xf32>
    %154 = arith.cmpf ogt, %152, %153 : vector<64x128xf32>
    %cst_39 = arith.constant 0.00999999977 : f32
    %155 = vector.broadcast %cst_39 : f32 to vector<64x128xf32>
    %156 = arith.mulf %155, %152 : vector<64x128xf32>
    %157 = arith.select %154, %152, %156 : vector<64x128xi1>, vector<64x128xf32>
    %c64_40 = arith.constant 64 : index
    %c0_41 = arith.constant 0 : index
    %158 = vector.load %arg2[%c64_40, %c0_41] : memref<200x128xf32, #tpu.memory_space<vmem>>, vector<128x32xf32>
    %c194 = arith.constant 194 : index
    %c0_42 = arith.constant 0 : index
    %159 = vector.load %arg2[%c194, %c0_42] : memref<200x128xf32, #tpu.memory_space<vmem>>, vector<1x32xf32>
    %cst_43 = arith.constant dense<0.000000e+00> : vector<64x32xf32>
    %160 = tpu.matmul %157, %158, %cst_43 {dimension_numbers = #tpu.dot_dimension_numbers<[1], [0], [0], [1], [0, 0, 1, 1], [], []>} : vector<64x128xf32>, vector<128x32xf32>, vector<64x32xf32> -> vector<64x32xf32>
    %161 = vector.broadcast %159 : vector<1x32xf32> to vector<64x32xf32>
    %162 = arith.addf %160, %161 : vector<64x32xf32>
    %163 = arith.addf %162, %147 : vector<64x32xf32>
    %cst_44 = arith.constant dense<0.000000e+00> : vector<64xf32>
    %164 = vector.multi_reduction <add>, %163, %cst_44 [1] : vector<64x32xf32> to vector<64xf32>
    %165 = vector.shape_cast %164 : vector<64xf32> to vector<64x1xf32>
    %166 = arith.mulf %163, %163 : vector<64x32xf32>
    %cst_45 = arith.constant dense<0.000000e+00> : vector<64xf32>
    %167 = vector.multi_reduction <add>, %166, %cst_45 [1] : vector<64x32xf32> to vector<64xf32>
    %168 = vector.shape_cast %167 : vector<64xf32> to vector<64x1xf32>
    %169 = vector.extract_strided_slice %165 {offsets = [0, 0], sizes = [32, 1], strides = [1, 1]} : vector<64x1xf32> to vector<32x1xf32>
    %170 = vector.extract_strided_slice %168 {offsets = [0, 0], sizes = [32, 1], strides = [1, 1]} : vector<64x1xf32> to vector<32x1xf32>
    %171 = vector.extract_strided_slice %165 {offsets = [32, 0], sizes = [32, 1], strides = [1, 1]} : vector<64x1xf32> to vector<32x1xf32>
    %172 = arith.addf %169, %171 : vector<32x1xf32>
    %173 = vector.extract_strided_slice %168 {offsets = [32, 0], sizes = [32, 1], strides = [1, 1]} : vector<64x1xf32> to vector<32x1xf32>
    %174 = arith.addf %170, %173 : vector<32x1xf32>
    %cst_46 = arith.constant 1.562500e-02 : f32
    %175 = vector.broadcast %cst_46 : f32 to vector<32x1xf32>
    %176 = arith.mulf %172, %175 : vector<32x1xf32>
    %cst_47 = arith.constant 1.562500e-02 : f32
    %177 = vector.broadcast %cst_47 : f32 to vector<32x1xf32>
    %178 = arith.mulf %174, %177 : vector<32x1xf32>
    %179 = arith.mulf %176, %176 : vector<32x1xf32>
    %180 = arith.subf %178, %179 : vector<32x1xf32>
    %cst_48 = arith.constant 9.99999974E-6 : f32
    %181 = vector.broadcast %cst_48 : f32 to vector<32x1xf32>
    %182 = arith.addf %180, %181 : vector<32x1xf32>
    %183 = math.rsqrt %182 : vector<32x1xf32>
    %184 = arith.mulf %116, %183 : vector<32x1xf32>
    %185 = arith.mulf %176, %184 : vector<32x1xf32>
    %186 = arith.subf %117, %185 : vector<32x1xf32>
    %187 = tpu.concatenate %184, %184 in 0 : vector<32x1xf32>, vector<32x1xf32> -> vector<64x1xf32>
    %188 = tpu.concatenate %186, %186 in 0 : vector<32x1xf32>, vector<32x1xf32> -> vector<64x1xf32>
    %189 = vector.broadcast %187 : vector<64x1xf32> to vector<64x32xf32>
    %190 = arith.mulf %163, %189 : vector<64x32xf32>
    %191 = vector.broadcast %188 : vector<64x1xf32> to vector<64x32xf32>
    %192 = arith.addf %190, %191 : vector<64x32xf32>
    %c64_49 = arith.constant 64 : index
    %c64_50 = arith.constant 64 : index
    %193 = vector.load %arg2[%c64_49, %c64_50] : memref<200x128xf32, #tpu.memory_space<vmem>>, vector<32x32xf32>
    %c194_51 = arith.constant 194 : index
    %c32_52 = arith.constant 32 : index
    %194 = vector.load %arg2[%c194_51, %c32_52] : memref<200x128xf32, #tpu.memory_space<vmem>>, vector<1x32xf32>
    %cst_53 = arith.constant dense<0.000000e+00> : vector<64x32xf32>
    %195 = tpu.matmul %192, %193, %cst_53 {dimension_numbers = #tpu.dot_dimension_numbers<[1], [0], [0], [1], [0, 0, 1, 1], [], []>} : vector<64x32xf32>, vector<32x32xf32>, vector<64x32xf32> -> vector<64x32xf32>
    %196 = vector.broadcast %194 : vector<1x32xf32> to vector<64x32xf32>
    %197 = arith.addf %195, %196 : vector<64x32xf32>
    %c0_54 = arith.constant 0 : index
    %c0_55 = arith.constant 0 : index
    %198 = vector.load %arg3[%c0_54, %c0_55] : memref<64x32xf32, #tpu.memory_space<vmem>>, vector<64x32xf32>
    tpu.vector_store %arg3[%c0_54, %c0_55], %197 {strides = array<i32>} : memref<64x32xf32, #tpu.memory_space<vmem>>, vector<64x32xf32>,
    return
  }
  func.func @transform_0(%arg0: i32) -> (i32, i32) {
    %c0_i32 = arith.constant 0 : i32
    %c0_i32_0 = arith.constant 0 : i32
    %c0_i32_1 = arith.constant 0 : i32
    return %c0_i32, %c0_i32_0 : i32, i32
  }
  func.func @transform_1(%arg0: i32) -> (i32, i32) {
    %c0_i32 = arith.constant 0 : i32
    %c0_i32_0 = arith.constant 0 : i32
    %c0_i32_1 = arith.constant 0 : i32
    return %c0_i32, %c0_i32_0 : i32, i32
  }
  func.func @transform_2(%arg0: i32) -> (i32, i32) {
    %c0_i32 = arith.constant 0 : i32
    %c0_i32_0 = arith.constant 0 : i32
    %c0_i32_1 = arith.constant 0 : i32
    return %c0_i32, %c0_i32_0 : i32, i32
  }
}

</mosaic_0001>

<bundles_post_ra>
// kernel: encoder_forward.1
= control target key start
LH: loop header
LB: loop body
LE: loop exit
PB: predicated region body
PF: predicated region fallthrough
CT: control target
= control target key end

     0   :  { %vm28_vm0 = vcmask 261120   ;;  %s4069_s23 = smov 96   ;;  %v5363_v20 = vmov 0.0   ;;  %vm4071_vm1 = vmmov 0   ;;  %s4072_s25 = smov 64   ;;  %v4073_v58 = vmov 3   ;;  %s5360_s1 = inlined_call_operand.vmem [shape: f32[200,128], index: 1, kind: input, shape index: {}]   ;;  %s5361_s0 = inlined_call_operand.vmem [shape: f32[64,32], index: 0, kind: input, shape index: {}]   ;;  %s5362_s2 = inlined_call_operand.vmem [shape: f32[64,32], index: 2, kind: output, shape index: {}]  }
   0x1   :  { %v22_v0 = vld [vmem:[%s5360_s1 + $0x18] sm:$0xff]  ;;  %v21_v1 = vld [vmem:[%s5360_s1 + $0x10] sm:$0xff]  ;;  %v11_v2 = vld [vmem:[%s5361_s0] sm:$0xff]  ;;  %3702 = vmatprep.subr.mxu1 %v5363_v20  ;;  %3704 = vmatprep.mubr.msk.f32.mxu1 %vm4071_vm1, %v5363_v20  ;;  %v4074_v59 = vmov 0   ;;  %v1382_v60 = vlaneseq  ;;  %vm1395_vm3 = vcmask 64512   ;;  %s4081_s30 = smov 32  }
   0x2   :  { %3677 = vmatprep.subr.mxu0 %v22_v0  ;;  %v20_v3 = vld [vmem:[%s5360_s1 + $0x8] sm:$0xff]  ;;  %3685 = vmatprep.mubr.msk.f32.mxu0 %vm28_vm0, %v11_v2  ;;  %v19_v4 = vld [vmem:[%s5360_s1] sm:$0xff]  ;;  %v160_v8 = vld [vmem:[%s5360_s1 + $0x50] sm:$0xff] }
   0x3   :  { %3678 = vmatpush3.msra.mxu0 %v22_v0  ;;  %v158_v5 = vld [vmem:[%s5360_s1 + $0x40] sm:$0xff]  ;;  %v159_v6 = vld [vmem:[%s5360_s1 + $0x48] sm:$0xff]  ;;  %v13_v9 = vld [vmem:[%s5361_s0 + $0x10] sm:$0xff]  ;;  %3942 = vset.pattern.permute.xlu1 %v4073_v58  ;;  %v4346_v61 = vshrl.u32 %v1382_v60, 7  ;;  %v4348_v62 = vand.u32 127, %v1382_v60  ;;  %v4080_v60 = vmov 6  }
   0x4   :  { %3679 = vmatprep.subr.mxu0 %v21_v1  ;;  %783 = vrot.lane.b32.xlu0 %v158_v5, %s4069_s23  ;;  %v12_v7 = vld [vmem:[%s5361_s0 + $0x8] sm:$0xff]  ;;  %v161_v10 = vld [vmem:[%s5360_s1 + $0x58] sm:$0xff]  ;;  %v162_v12 = vld [vmem:[%s5360_s1 + $0x60] sm:$0xff] }
   0x5   :  { %3680 = vmatpush3.msra.mxu0 %v21_v1  ;;  %858 = vrot.lane.b32.xlu1 %v159_v6, %s4069_s23  ;;  %v14_v11 = vld [vmem:[%s5361_s0 + $0x18] sm:$0xff]  ;;  %v15_v13 = vld [vmem:[%s5361_s0 + $0x20] sm:$0xff]  ;;  %v163_v14 = vld [vmem:[%s5360_s1 + $0x68] sm:$0xff]  ;;  %vm4352_vm2 = vcmp.le.s32.totalorder %v4348_v62, %v4346_v61 }
   0x6   :  { %3681 = vmatprep.subr.mxu0 %v20_v3  ;;  %v16_v15 = vld [vmem:[%s5361_s0 + $0x28] sm:$0xff]  ;;  %v164_v16 = vld [vmem:[%s5360_s1 + $0x70] sm:$0xff]  ;;  %v18_v18 = vld [vmem:[%s5361_s0 + $0x38] sm:$0xff]  ;;  %3939 = vset.pattern.permute.xlu0 %v4074_v59 }
   0x7   :  { %3682 = vmatpush3.msra.mxu0 %v20_v3  ;;  %v17_v17 = vld [vmem:[%s5361_s0 + $0x30] sm:$0xff]  ;;  %v165_v19 = vld [vmem:[%s5360_s1 + $0x78] sm:$0xff]  ;;  %v3481_v21 = vld [vmem:[%s5360_s1 + $0xc0] ss:$0 sm:$0xff] }
   0x8   :  { %3683 = vmatprep.subr.mxu0 %v19_v4  ;;  %933 = vrot.lane.b32.xlu0 %v160_v8, %s4069_s23 }
   0x9   :  { %3684 = vmatpush3.msra.mxu0 %v19_v4  ;;  %1008 = vrot.lane.b32.xlu1 %v161_v10, %s4069_s23 }
   0xa   :  { %3686 = vmatmul.mubr.msk.f32.vlgmr.msra.gmra.mxu0 %vm28_vm0, %v12_v7  ;;  %3697 = vmatprep.subr.mxu0 %v5363_v20 }
   0xb   :  { %3688 = vmatprep.mubr.msk.f32.mxu0 %vm28_vm0, %v13_v9 }
   0xc   :  { %1083 = vrot.lane.b32.xlu0 %v162_v12, %s4069_s23 }
   0xd   :  { %1158 = vrot.lane.b32.xlu1 %v163_v14, %s4069_s23 }
   0xe   :  { %3689 = vmatmul.mubr.msk.f32.gmra.mxu0 %vm28_vm0, %v14_v11 }
   0xf   :  { %3691 = vmatprep.mubr.msk.f32.mxu0 %vm28_vm0, %v15_v13 }
  0x10   :  { %1233 = vrot.lane.b32.xlu0 %v164_v16, %s4069_s23 }
  0x11   :  { %1308 = vrot.lane.b32.xlu1 %v165_v19, %s4069_s23 }
  0x12   :  { %3692 = vmatmul.mubr.msk.f32.gmra.mxu0 %vm28_vm0, %v16_v15 }
  0x13   :  { %3694 = vmatprep.mubr.msk.f32.mxu0 %vm28_vm0, %v17_v17 }
  0x16   :  { %3695 = vmatmul.mubr.msk.f32.gmra.mxu0 %vm28_vm0, %v18_v18 }
  0x17   :  { %3699 = vmatprep.mubr.msk.f32.mxu0 %vm4071_vm1, %v5363_v20 }
  0x76   :  { %v784_v38 = vpop.permute.xlu0 %783 }
  0x77   :  { %v859_v39 = vpop.permute.xlu1 %858 }
  0x7a   :  { %v934_v40 = vpop.permute.xlu0 %933 }
  0x7b   :  { %v1009_v41 = vpop.permute.xlu1 %1008 }
  0x7e   :  { %v4227_v42 = vpop.permute.xlu0 %1083 }
  0x7f   :  { %v1159_v43 = vpop.permute.xlu1 %1158 }
  0x82   :  { %v4229_v44 = vpop.permute.xlu0 %1233 }
  0x83   :  { %v4231_v45 = vpop.permute.xlu1 %1308 }
  0xca   :  { %v3687_v22 = vpop.f32.mrf.mxu0 }
  0xcb   :  { %v4187_v23 = vadd.f32 %v3687_v22, %v3481_v21 }
  0xcc   :  { %v119_v24 = vpop.f32.mrf.mxu0 }
  0xcd   :  { %244 = vrot.lane.b32.xlu0 %v4187_v23, %s4069_s23  ;;  %v4197_v29 = vadd.f32 %v3481_v21, %v119_v24 }
  0xce   :  { %v3690_v25 = vpop.f32.mrf.mxu0 }
  0xcf   :  { %v4191_v26 = vadd.f32 %v3690_v25, %v3481_v21 }
  0xd0   :  { %v129_v27 = vpop.f32.mrf.mxu0 }
  0xd1   :  { %1978 = vrot.lane.b32.xlu0 %v4187_v23, %s4072_s25  ;;  %398 = vrot.lane.b32.xlu1 %v4191_v26, %s4069_s23  ;;  %v4203_v31 = vadd.f32 %v3481_v21, %v129_v27 }
  0xd2   :  { %v3693_v28 = vpop.f32.mrf.mxu0 }
  0xd3   :  { %v4209_v32 = vadd.f32 %v3693_v28, %v3481_v21 }
  0xd4   :  { %v139_v30 = vpop.f32.mrf.mxu0 }
  0xd5   :  { %2130 = vrot.lane.b32.xlu1 %v4191_v26, %s4072_s25  ;;  %167 = vrot.lane.b32.xlu0 %v4197_v29, %s4069_s23  ;;  %v4217_v36 = vadd.f32 %v3481_v21, %v139_v30 }
  0xd6   :  { %v3696_v33 = vpop.f32.mrf.mxu0 }
  0xd7   :  { %v4215_v34 = vadd.f32 %v3696_v33, %v3481_v21 }
  0xd8   :  { %v149_v35 = vpop.f32.mrf.mxu0 }
  0xd9   :  { %321 = vrot.lane.b32.xlu1 %v4203_v31, %s4069_s23  ;;  %1902 = vrot.lane.b32.xlu0 %v4197_v29, %s4072_s25  ;;  %v4223_v37 = vadd.f32 %v3481_v21, %v149_v35 }
  0xdd   :  { %552 = vrot.lane.b32.xlu1 %v4209_v32, %s4069_s23  ;;  %2054 = vrot.lane.b32.xlu0 %v4203_v31, %s4072_s25 }
  0xe1   :  { %706 = vrot.lane.b32.xlu1 %v4215_v34, %s4069_s23  ;;  %475 = vrot.lane.b32.xlu0 %v4217_v36, %s4069_s23 }
  0xe5   :  { %629 = vrot.lane.b32.xlu0 %v4223_v37, %s4069_s23 }
 0x13f   :  { %v245_v46 = vpop.permute.xlu0 %244 }
 0x140   :  { %3703 = vmatpush3.xpose.msk.msra.mxu1 %vm28_vm0, %v245_v46 }
 0x141   :  { %3707 = vmatprep.subr.mxu1 %v5363_v20 }
 0x143   :  { %3705 = vmatmul.mubr.msk.f32.vlgmr.msra.gmra.mxu1 %vm28_vm0, %v4187_v23  ;;  %v4237_v47 = vpop.permute.xlu0 %1978  ;;  %v399_v48 = vpop.permute.xlu1 %398 }
 0x144   :  { %3709 = vmatprep.mubr.msk.f32.mxu1 %vm4071_vm1, %v5363_v20 }
 0x147   :  { %v4241_v49 = vpop.permute.xlu1 %2130  ;;  %v168_v50 = vpop.permute.xlu0 %167 }
 0x148   :  { %3698 = vmatpush3.xpose.msk.msra.mxu0 %vm28_vm0, %v168_v50 }
 0x149   :  { %3722 = vmatprep.subr.mxu0 %v5363_v20 }
 0x14b   :  { %v322_v51 = vpop.permute.xlu1 %321  ;;  %3700 = vmatmul.mubr.msk.f32.vlgmr.msra.gmra.mxu0 %vm28_vm0, %v4197_v29  ;;  %v4247_v52 = vpop.permute.xlu0 %1902 }
 0x14c   :  { %3708 = vmatpush3.xpose.msk.msra.mxu1 %vm28_vm0, %v322_v51  ;;  %3724 = vmatprep.mubr.msk.f32.mxu0 %vm4071_vm1, %v5363_v20 }
 0x14d   :  { %3712 = vmatprep.subr.mxu1 %v5363_v20 }
 0x14f   :  { %3710 = vmatmul.mubr.msk.f32.vlgmr.msra.gmra.mxu1 %vm28_vm0, %v4203_v31  ;;  %v553_v53 = vpop.permute.xlu1 %552  ;;  %v4255_v54 = vpop.permute.xlu0 %2054 }
 0x150   :  { %5366 = vst [vmem:[#allocation2_spill] sm:$0xff] %v4255_v54  ;;  %3713 = vmatpush3.xpose.msk.msra.mxu1 %vm28_vm0, %v399_v48  ;;  %3723 = vmatpush3.xpose.msk.msra.mxu0 %vm28_vm0, %v553_v53  ;;  %v4076_v53 = vmov 7  }
 0x151   :  { %3714 = vmatprep.mubr.msk.f32.mxu1 %vm4071_vm1, %v5363_v20  ;;  %3717 = vmatprep.subr.mxu1 %v5363_v20 }
 0x152   :  { %3732 = vmatprep.subr.mxu0 %v5363_v20 }
 0x153   :  { %3715 = vmatmul.mubr.msk.f32.vlgmr.msra.gmra.mxu1 %vm28_vm0, %v4191_v26  ;;  %v707_v55 = vpop.permute.xlu1 %706  ;;  %3725 = vmatmul.mubr.msk.f32.vlgmr.msra.gmra.mxu0 %vm28_vm0, %v4209_v32  ;;  %v476_v56 = vpop.permute.xlu0 %475 }
 0x154   :  { %3718 = vmatpush3.xpose.msk.msra.mxu1 %vm28_vm0, %v476_v56  ;;  %3733 = vmatpush3.xpose.msk.msra.mxu0 %vm28_vm0, %v707_v55  ;;  %v4077_v55 = vmov 1   ;;  %v4078_v56 = vmov 2  }
 0x155   :  { %3719 = vmatprep.mubr.msk.f32.mxu1 %vm4071_vm1, %v5363_v20  ;;  %3734 = vmatprep.mubr.msk.f32.mxu0 %vm4071_vm1, %v5363_v20 }
 0x156   :  { %3727 = vmatprep.subr.mxu1 %v5363_v20  ;;  %3742 = vmatprep.subr.mxu0 %v5363_v20 }
 0x157   :  { %3720 = vmatmul.mubr.msk.f32.vlgmr.msra.gmra.mxu1 %vm28_vm0, %v4217_v36  ;;  %3735 = vmatmul.mubr.msk.f32.vlgmr.msra.gmra.mxu0 %vm28_vm0, %v4215_v34  ;;  %v630_v57 = vpop.permute.xlu0 %629 }
 0x158   :  { %3728 = vmatpush3.xpose.msk.msra.mxu1 %vm28_vm0, %v630_v57  ;;  %3743 = vmatpush3.xpose.msk.msra.mxu0 %vm28_vm0, %v859_v39  ;;  %v4079_v57 = vmov 4  }
 0x159   :  { %3729 = vmatprep.mubr.msk.f32.mxu1 %vm4071_vm1, %v5363_v20  ;;  %3744 = vmatprep.mubr.msk.f32.mxu0 %vm4071_vm1, %v5363_v20 }
 0x15a   :  { %3737 = vmatprep.subr.mxu1 %v5363_v20  ;;  %3752 = vmatprep.subr.mxu0 %v5363_v20 }
 0x15b   :  { %3730 = vmatmul.mubr.msk.f32.vlgmr.msra.gmra.mxu1 %vm28_vm0, %v4223_v37  ;;  %3745 = vmatmul.mubr.msk.f32.vlgmr.msra.gmra.mxu0 %vm28_vm0, %v4187_v23 }
 0x15c   :  { %3738 = vmatpush3.xpose.msk.msra.mxu1 %vm28_vm0, %v784_v38  ;;  %3753 = vmatpush3.xpose.msk.msra.mxu0 %vm28_vm0, %v1009_v41 }
 0x15d   :  { %3739 = vmatprep.mubr.msk.f32.mxu1 %vm4071_vm1, %v5363_v20  ;;  %3754 = vmatprep.mubr.msk.f32.mxu0 %vm4071_vm1, %v5363_v20 }
 0x15e   :  { %3747 = vmatprep.subr.mxu1 %v5363_v20  ;;  %3762 = vmatprep.subr.mxu0 %v5363_v20 }
 0x15f   :  { %3740 = vmatmul.mubr.msk.f32.vlgmr.msra.gmra.mxu1 %vm28_vm0, %v4197_v29  ;;  %3755 = vmatmul.mubr.msk.f32.vlgmr.msra.gmra.mxu0 %vm28_vm0, %v4191_v26 }
 0x160   :  { %3748 = vmatpush3.xpose.msk.msra.mxu1 %vm28_vm0, %v934_v40  ;;  %3763 = vmatpush3.xpose.msk.msra.mxu0 %vm28_vm0, %v1159_v43 }
 0x161   :  { %3749 = vmatprep.mubr.msk.f32.mxu1 %vm4071_vm1, %v5363_v20  ;;  %3764 = vmatprep.mubr.msk.f32.mxu0 %vm4071_vm1, %v5363_v20 }
 0x162   :  { %3757 = vmatprep.subr.mxu1 %v5363_v20  ;;  %3772 = vmatprep.subr.mxu0 %v5363_v20 }
 0x163   :  { %3750 = vmatmul.mubr.msk.f32.vlgmr.msra.gmra.mxu1 %vm28_vm0, %v4203_v31  ;;  %3765 = vmatmul.mubr.msk.f32.vlgmr.msra.gmra.mxu0 %vm28_vm0, %v4209_v32 }
 0x164   :  { %3758 = vmatpush3.xpose.msk.msra.mxu1 %vm28_vm0, %v4227_v42  ;;  %3773 = vmatpush3.xpose.msk.msra.mxu0 %vm28_vm0, %v4231_v45 }
 0x165   :  { %3759 = vmatprep.mubr.msk.f32.mxu1 %vm4071_vm1, %v5363_v20  ;;  %3774 = vmatprep.mubr.msk.f32.mxu0 %vm4071_vm1, %v5363_v20 }
 0x166   :  { %3767 = vmatprep.subr.mxu1 %v5363_v20  ;;  %3782 = vmatprep.subr.mxu0 %v5363_v20 }
 0x167   :  { %3760 = vmatmul.mubr.msk.f32.vlgmr.msra.gmra.mxu1 %vm28_vm0, %v4217_v36  ;;  %3775 = vmatmul.mubr.msk.f32.vlgmr.msra.gmra.mxu0 %vm28_vm0, %v4215_v34 }
 0x168   :  { %3768 = vmatpush3.xpose.msk.msra.mxu1 %vm28_vm0, %v4229_v44  ;;  %3783 = vmatpush3.msra.mxu0 %v4237_v47 }
 0x169   :  { %3769 = vmatprep.mubr.msk.f32.mxu1 %vm4071_vm1, %v5363_v20  ;;  %3777 = vmatprep.subr.mxu1 %v5363_v20 }
 0x16a   :  { %3784 = vmatprep.mubr.msk.f32.mxu0 %vm4071_vm1, %v5363_v20  ;;  %3792 = vmatprep.subr.mxu0 %v5363_v20 }
 0x16b   :  { %3770 = vmatmul.mubr.msk.f32.vlgmr.msra.gmra.mxu1 %vm28_vm0, %v4223_v37 }
 0x16c   :  { %3778 = vmatpush3.msra.mxu1 %v4247_v52  ;;  %3779 = vmatprep.mubr.msk.f32.mxu1 %vm4071_vm1, %v5363_v20  ;;  %v4075_v52 = vmov 5  }
 0x16d   :  { %3787 = vmatprep.subr.mxu1 %v5363_v20 }
 0x203   :  { %v316_v0 = vpop.f32.mrf.mxu1 }
 0x204   :  { %v4358_v1 = vsel %vm4352_vm2, -1e+20, %v316_v0 }
 0x205   :  { %v3706_v2 = vpop.f32.mrf.mxu1  ;;  %v1399_v3 = vsel %vm1395_vm3, %v4358_v1, -inf }
 0x206   :  { %1400 = vmax.xlane.f32.xlu1 %v1399_v3 }
 0x20b   :  { %v239_v4 = vpop.f32.mrf.mxu0 }
 0x20c   :  { %v4364_v5 = vsel %vm4352_vm2, -1e+20, %v239_v4 }
 0x20d   :  { %v3701_v6 = vpop.f32.mrf.mxu0  ;;  %v1396_v7 = vsel %vm1395_vm3, %v4364_v5, -inf }
 0x20e   :  { %1397 = vmax.xlane.f32.xlu0 %v1396_v7 }
 0x20f   :  { %v393_v8 = vpop.f32.mrf.mxu1 }
 0x210   :  { %v4370_v9 = vsel %vm4352_vm2, -1e+20, %v393_v8 }
 0x211   :  { %v3711_v10 = vpop.f32.mrf.mxu1  ;;  %v1402_v11 = vsel %vm1395_vm3, %v4370_v9, -inf }
 0x212   :  { %1403 = vmax.xlane.f32.xlu0 %v1402_v11 }
 0x213   :  { %v470_v12 = vpop.f32.mrf.mxu1  ;;  %v624_v13 = vpop.f32.mrf.mxu0 }
 0x214   :  { %v4376_v14 = vsel %vm4352_vm2, -1e+20, %v624_v13  ;;  %v4382_v18 = vsel %vm4352_vm2, -1e+20, %v470_v12 }
 0x215   :  { %v3716_v15 = vpop.f32.mrf.mxu1  ;;  %v3726_v16 = vpop.f32.mrf.mxu0  ;;  %v1411_v17 = vsel %vm1395_vm3, %v4376_v14, -inf  ;;  %v1405_v25 = vsel %vm1395_vm3, %v4382_v18, -inf }
 0x216   :  { %1412 = vmax.xlane.f32.xlu0 %v1411_v17 }
 0x217   :  { %v547_v19 = vpop.f32.mrf.mxu1  ;;  %v778_v21 = vpop.f32.mrf.mxu0 }
 0x218   :  { %v4386_v22 = vsel %vm4352_vm2, -1e+20, %v547_v19  ;;  %v4394_v27 = vsel %vm4352_vm2, -1e+20, %v778_v21 }
 0x219   :  { %v3721_v23 = vpop.f32.mrf.mxu1  ;;  %v3736_v24 = vpop.f32.mrf.mxu0  ;;  %v1408_v26 = vsel %vm1395_vm3, %v4386_v22, -inf  ;;  %v1417_v33 = vsel %vm1395_vm3, %v4394_v27, -inf }
 0x21a   :  { %1406 = vmax.xlane.f32.xlu0 %v1405_v25  ;;  %1409 = vmax.xlane.f32.xlu1 %v1408_v26 }
 0x21b   :  { %v701_v28 = vpop.f32.mrf.mxu1  ;;  %v928_v29 = vpop.f32.mrf.mxu0 }
 0x21c   :  { %v4425_v0 = vsel %vm4352_vm2, -1e+20, %v701_v28 }
 0x21d   :  { %v3731_v30 = vpop.f32.mrf.mxu1  ;;  %v3746_v31 = vpop.f32.mrf.mxu0  ;;  %v1414_v2 = vsel %vm1395_vm3, %v4425_v0, -inf }
 0x21e   :  { %1418 = vmax.xlane.f32.xlu0 %v1417_v33 }
 0x21f   :  { %v4398_v35 = vpop.f32.mrf.mxu1  ;;  %v4400_v38 = vpop.f32.mrf.mxu0 }
 0x221   :  { %v3741_v39 = vpop.f32.mrf.mxu1  ;;  %v3756_v40 = vpop.f32.mrf.mxu0 }
 0x223   :  { %v4402_v41 = vpop.f32.mrf.mxu1  ;;  %v4404_v42 = vpop.f32.mrf.mxu0 }
 0x225   :  { %v3751_v43 = vpop.f32.mrf.mxu1  ;;  %v3766_v44 = vpop.f32.mrf.mxu0 }
 0x227   :  { %v4406_v45 = vpop.f32.mrf.mxu1  ;;  %v4408_v46 = vpop.f32.mrf.mxu0 }
 0x229   :  { %v3761_v47 = vpop.f32.mrf.mxu1  ;;  %v3776_v48 = vpop.f32.mrf.mxu0 }
 0x22b   :  { %1651 = vperm.xlu1 %3942, %v928_v29   ;;  %v4410_v50 = vpop.f32.mrf.mxu1 }
 0x22d   :  { %v3771_v51 = vpop.f32.mrf.mxu1 }
 0x22f   :  { %3944 = vset.pattern.permute.xlu1 %v4075_v52 }
 0x230   :  { %1751 = vperm.xlu1 %3944, %v928_v29  }
 0x234   :  { %1495 = vperm.xlu0 %3939, %v928_v29   ;;  %3946 = vset.pattern.permute.xlu1 %v4076_v53 }
 0x235   :  { %1851 = vperm.xlu1 %3946, %v928_v29  }
 0x238   :  { %3940 = vset.pattern.permute.xlu0 %v4077_v55 }
 0x239   :  { %1551 = vperm.xlu0 %3940, %v928_v29   ;;  %3948 = vset.pattern.permute.xlu1 %v4077_v55 }
 0x23d   :  { %3941 = vset.pattern.permute.xlu0 %v4078_v56 }
 0x23e   :  { %1601 = vperm.xlu0 %3941, %v928_v29  }
 0x242   :  { %3943 = vset.pattern.permute.xlu0 %v4079_v57 }
 0x243   :  { %1701 = vperm.xlu0 %3943, %v928_v29  }
 0x247   :  { %3945 = vset.pattern.permute.xlu0 %v4080_v60 }
 0x248   :  { %1801 = vperm.xlu0 %3945, %v928_v29  }
 0x24c   :  { %3947 = vset.pattern.permute.xlu0 %v4074_v59 }
 0x24d   :  { %1505 = vperm.xlu0 %3947, %v4400_v38  }
 0x251   :  { %3952 = vset.pattern.permute.xlu0 %v4075_v52 }
 0x252   :  { %1759 = vperm.xlu0 %3952, %v4400_v38  }
 0x256   :  { %3954 = vset.pattern.permute.xlu0 %v4076_v53 }
 0x257   :  { %1859 = vperm.xlu0 %3954, %v4400_v38  }
 0x259   :  { %1415 = vmax.xlane.f32.xlu1 %v1414_v2 }
 0x25b   :  { %3955 = vset.pattern.permute.xlu0 %v4074_v59 }
 0x25c   :  { %1490 = vperm.xlu0 %3955, %v4398_v35  }
 0x260   :  { %3964 = vset.pattern.permute.xlu0 %v4077_v55 }
 0x261   :  { %1567 = vperm.xlu0 %3964, %v4404_v42  }
 0x265   :  { %3965 = vset.pattern.permute.xlu0 %v4078_v56 }
 0x266   :  { %1617 = vperm.xlu0 %3965, %v4404_v42  }
 0x26a   :  { %1559 = vperm.xlu1 %3948, %v4400_v38   ;;  %3967 = vset.pattern.permute.xlu0 %v4079_v57 }
 0x26b   :  { %1717 = vperm.xlu0 %3967, %v4404_v42  }
 0x26e   :  { %3949 = vset.pattern.permute.xlu1 %v4078_v56 }
 0x26f   :  { %1609 = vperm.xlu1 %3949, %v4400_v38   ;;  %3973 = vset.pattern.permute.xlu0 %v4078_v56 }
 0x270   :  { %1605 = vperm.xlu0 %3973, %v4402_v41  }
 0x273   :  { %3950 = vset.pattern.permute.xlu1 %v4073_v58 }
 0x274   :  { %1659 = vperm.xlu1 %3950, %v4400_v38   ;;  %3974 = vset.pattern.permute.xlu0 %v4073_v58 }
 0x275   :  { %1655 = vperm.xlu0 %3974, %v4402_v41  }
 0x278   :  { %3951 = vset.pattern.permute.xlu1 %v4079_v57 }
 0x279   :  { %1709 = vperm.xlu1 %3951, %v4400_v38   ;;  %3979 = vset.pattern.permute.xlu0 %v4074_v59 }
 0x27a   :  { %1525 = vperm.xlu0 %3979, %v4408_v46  }
 0x27d   :  { %3953 = vset.pattern.permute.xlu1 %v4080_v60 }
 0x27e   :  { %1809 = vperm.xlu1 %3953, %v4400_v38   ;;  %3982 = vset.pattern.permute.xlu0 %v4073_v58 }
 0x27f   :  { %1675 = vperm.xlu0 %3982, %v4408_v46  }
 0x282   :  { %3956 = vset.pattern.permute.xlu1 %v4077_v55 }
 0x283   :  { %1547 = vperm.xlu1 %3956, %v4398_v35   ;;  %3983 = vset.pattern.permute.xlu0 %v4079_v57 }
 0x284   :  { %1725 = vperm.xlu0 %3983, %v4408_v46  }
 0x287   :  { %3957 = vset.pattern.permute.xlu1 %v4078_v56 }
 0x288   :  { %1597 = vperm.xlu1 %3957, %v4398_v35   ;;  %3989 = vset.pattern.permute.xlu0 %v4078_v56 }
 0x289   :  { %1613 = vperm.xlu0 %3989, %v4406_v45  }
 0x28c   :  { %3958 = vset.pattern.permute.xlu1 %v4073_v58 }
 0x28d   :  { %1647 = vperm.xlu1 %3958, %v4398_v35   ;;  %3990 = vset.pattern.permute.xlu0 %v4073_v58 }
 0x28e   :  { %1663 = vperm.xlu0 %3990, %v4406_v45  }
 0x28f   :  { %v1401_v7 = vpop.xlane.xlu1 %1400 }
 0x290   :  { %v1421_v8 = vsub.f32 %v4358_v1, %v1401_v7 }
 0x291   :  { %3959 = vset.pattern.permute.xlu1 %v4079_v57 }
 0x292   :  { %1697 = vperm.xlu1 %3959, %v4398_v35   ;;  %3991 = vset.pattern.permute.xlu0 %v4079_v57  ;;  %v1430_v11 = vmul.f32 1.442695, %v1421_v8 }
 0x293   :  { %1713 = vperm.xlu0 %3991, %v4406_v45  }
 0x294   :  { %4013 = vpow2.f32 %v1430_v11 }
 0x296   :  { %3960 = vset.pattern.permute.xlu1 %v4075_v52 }
 0x297   :  { %1747 = vperm.xlu1 %3960, %v4398_v35   ;;  %3994 = vset.pattern.permute.xlu0 %v4076_v53  ;;  %v4475_v3 = vpop.xlane.xlu0 %1397 }
 0x298   :  { %1863 = vperm.xlu0 %3994, %v4406_v45  }
 0x29b   :  { %3961 = vset.pattern.permute.xlu1 %v4080_v60  ;;  %v4481_v4 = vpop.xlane.xlu0 %1403 }
 0x29c   :  { %1797 = vperm.xlu1 %3961, %v4398_v35   ;;  %3998 = vset.pattern.permute.xlu0 %v4073_v58  ;;  %v1422_v54 = vsub.f32 %v4370_v9, %v4481_v4 }
 0x29d   :  { %1671 = vperm.xlu0 %3998, %v4410_v50  }
 0x29f   :  { %v4488_v6 = vpop.xlane.xlu0 %1412 }
 0x2a0   :  { %3962 = vset.pattern.permute.xlu1 %v4076_v53 }
 0x2a1   :  { %1847 = vperm.xlu1 %3962, %v4398_v35   ;;  %4002 = vset.pattern.permute.xlu0 %v4076_v53 }
 0x2a2   :  { %1871 = vperm.xlu0 %4002, %v4410_v50  }
 0x2a3   :  { %v1407_v10 = vpop.xlane.xlu0 %1406  ;;  %v4522_v21 = vpop.xlane.xlu1 %1409 }
 0x2a4   :  { %v1423_v12 = vsub.f32 %v4382_v18, %v1407_v10 }
 0x2a5   :  { %3963 = vset.pattern.permute.xlu1 %v4074_v59 }
 0x2a6   :  { %1515 = vperm.xlu1 %3963, %v4404_v42   ;;  %v1434_v13 = vmul.f32 1.442695, %v1423_v12  ;;  %v1484_v12 = vadd.s32 7, %v4348_v62 }
 0x2a7   :  { %v4504_v1 = vpop.xlane.xlu0 %1418  ;;  %v4528_v24 = vpop.permute.xlu1 %1651 }
 0x2a8   :  { %4015 = vpow2.f32 %v1434_v13 }
 0x2aa   :  { %3966 = vset.pattern.permute.xlu1 %v4073_v58  ;;  %v4502_v58 = vpop.eup %4013 }
 0x2ab   :  { %1667 = vperm.xlu1 %3966, %v4404_v42   ;;  %v1447_v15 = vsel %vm1395_vm3, %v4502_v58, 0.0  ;;  %v4535_v26 = vpop.permute.xlu1 %1751 }
 0x2af   :  { %3968 = vset.pattern.permute.xlu1 %v4075_v52  ;;  %v4512_v17 = vpop.permute.xlu0 %1495 }
 0x2b0   :  { %1767 = vperm.xlu1 %3968, %v4404_v42   ;;  %v4544_v29 = vpop.permute.xlu1 %1851 }
 0x2b4   :  { %3969 = vset.pattern.permute.xlu1 %v4080_v60  ;;  %v4518_v19 = vpop.permute.xlu0 %1551 }
 0x2b5   :  { %1817 = vperm.xlu1 %3969, %v4404_v42   ;;  %v4510_v16 = vpop.eup %4015 }
 0x2b6   :  { %v1453_v18 = vsel %vm1395_vm3, %v4510_v16, 0.0 }
 0x2b9   :  { %3970 = vset.pattern.permute.xlu1 %v4076_v53  ;;  %v4525_v23 = vpop.permute.xlu0 %1601 }
 0x2ba   :  { %1867 = vperm.xlu1 %3970, %v4404_v42  }
 0x2be   :  { %3971 = vset.pattern.permute.xlu1 %v4074_v59  ;;  %v4532_v25 = vpop.permute.xlu0 %1701 }
 0x2bf   :  { %1500 = vperm.xlu1 %3971, %v4402_v41  }
 0x2c1   :  { %1448 = vadd.xlane.f32.xlu0 %v1447_v15 }
 0x2c3   :  { %3972 = vset.pattern.permute.xlu1 %v4077_v55  ;;  %v4538_v28 = vpop.permute.xlu0 %1801 }
 0x2c4   :  { %1555 = vperm.xlu1 %3972, %v4402_v41  }
 0x2c5   :  { %1454 = vadd.xlane.f32.xlu0 %v1453_v18 }
 0x2c8   :  { %3975 = vset.pattern.permute.xlu1 %v4079_v57  ;;  %v4546_v30 = vpop.permute.xlu0 %1505 }
 0x2c9   :  { %1705 = vperm.xlu1 %3975, %v4402_v41  }
 0x2cd   :  { %3976 = vset.pattern.permute.xlu1 %v4075_v52  ;;  %v4551_v38 = vpop.permute.xlu0 %1759 }
 0x2ce   :  { %1755 = vperm.xlu1 %3976, %v4402_v41  }
 0x2d2   :  { %3977 = vset.pattern.permute.xlu1 %v4080_v60  ;;  %v4560_v40 = vpop.permute.xlu0 %1859 }
 0x2d3   :  { %1805 = vperm.xlu1 %3977, %v4402_v41  }
 0x2d7   :  { %3978 = vset.pattern.permute.xlu1 %v4076_v53  ;;  %v4567_v42 = vpop.permute.xlu0 %1490 }
 0x2d8   :  { %1855 = vperm.xlu1 %3978, %v4402_v41  }
 0x2db   :  { %2206 = vrot.lane.b32.xlu0 %v4217_v36, %s4072_s25 }
 0x2dc   :  { %3980 = vset.pattern.permute.xlu1 %v4077_v55  ;;  %v1568_v47 = vpop.permute.xlu0 %1567 }
 0x2dd   :  { %1575 = vperm.xlu1 %3980, %v4408_v46  }
 0x2e1   :  { %3981 = vset.pattern.permute.xlu1 %v4078_v56 }
 0x2e2   :  { %v1416_v31 = vpop.xlane.xlu1 %1415  ;;  %1625 = vperm.xlu1 %3981, %v4408_v46  }
 0x2e3   :  { %v1426_v33 = vsub.f32 %v4425_v0, %v1416_v31 }
 0x2e5   :  { %v1440_v35 = vmul.f32 1.442695, %v1426_v33 }
 0x2e6   :  { %v4553_v39 = vpop.permute.xlu1 %1559  ;;  %3984 = vset.pattern.permute.xlu1 %v4075_v52 }
 0x2e7   :  { %1775 = vperm.xlu1 %3984, %v4408_v46   ;;  %4017 = vpow2.f32 %v1440_v35 }
 0x2ea   :  { %v4557_v36 = vpop.permute.xlu1 %1609 }
 0x2eb   :  { %3985 = vset.pattern.permute.xlu1 %v4080_v60 }
 0x2ec   :  { %1825 = vperm.xlu1 %3985, %v4408_v46  }
 0x2ef   :  { %v4563_v41 = vpop.permute.xlu1 %1659 }
 0x2f0   :  { %3986 = vset.pattern.permute.xlu1 %v4076_v53 }
 0x2f1   :  { %1875 = vperm.xlu1 %3986, %v4408_v46   ;;  %v1618_v46 = vpop.permute.xlu0 %1617 }
 0x2f4   :  { %v4569_v43 = vpop.permute.xlu1 %1709  ;;  %v4572_v44 = vpop.eup %4017 }
 0x2f5   :  { %3987 = vset.pattern.permute.xlu1 %v4074_v59  ;;  %5369 = vst [vmem:[#allocation3_spill] sm:$0xff] %v4572_v44  ;;  %v1462_v51 = vsel %vm1395_vm3, %v4572_v44, 0.0  ;;  %v1718_v2 = vpop.permute.xlu0 %1717 }
 0x2f6   :  { %1510 = vperm.xlu1 %3987, %v4406_v45  }
 0x2f9   :  { %v4575_v48 = vpop.permute.xlu1 %1809  ;;  %v4592_v8 = vpop.permute.xlu0 %1605 }
 0x2fa   :  { %3988 = vset.pattern.permute.xlu1 %v4077_v55  ;;  %1463 = vadd.xlane.f32.xlu0 %v1462_v51 }
 0x2fb   :  { %1563 = vperm.xlu1 %3988, %v4406_v45  }
 0x2fd   :  { %v4599_v11 = vpop.permute.xlu0 %1655 }
 0x2fe   :  { %v4581_v53 = vpop.permute.xlu1 %1547 }
 0x2ff   :  { %3992 = vset.pattern.permute.xlu1 %v4075_v52 }
 0x300   :  { %1763 = vperm.xlu1 %3992, %v4406_v45  }
 0x303   :  { %v4585_v0 = vpop.permute.xlu1 %1597 }
 0x304   :  { %3993 = vset.pattern.permute.xlu1 %v4080_v60 }
 0x305   :  { %1813 = vperm.xlu1 %3993, %v4406_v45  }
 0x308   :  { %v4589_v7 = vpop.permute.xlu1 %1647 }
 0x309   :  { %3995 = vset.pattern.permute.xlu1 %v4074_v59  ;;  %v4607_v59 = vpop.permute.xlu0 %1525 }
 0x30a   :  { %1520 = vperm.xlu1 %3995, %v4410_v50  }
 0x30d   :  { %v4595_v10 = vpop.permute.xlu1 %1697 }
 0x30e   :  { %3996 = vset.pattern.permute.xlu1 %v4077_v55  ;;  %v4615_v55 = vsub.s32 %v1484_v12, %v4346_v61 }
 0x30f   :  { %1571 = vperm.xlu1 %3996, %v4410_v50  }
 0x310   :  { %2358 = vrot.lane.b32.xlu0 %v4223_v37, %s4072_s25  ;;  %v4617_v37 = vpop.permute.xlu0 %1675  ;;  %vm1486_vm4 = vcmp.eq.s32.totalorder %v4615_v55, 0  ;;  %vm1544_vm5 = vcmp.eq.s32.totalorder %v4615_v55, 1  ;;  %vm1594_vm7 = vcmp.eq.s32.totalorder %v4615_v55, 2  ;;  %vm1644_vm9 = vcmp.eq.s32.totalorder %v4615_v55, 3 }
 0x311   :  { %vm4627_vm6 = vmand %vm1486_vm4, %vm4352_vm2  ;;  %vm1694_vm11 = vcmp.eq.s32.totalorder %v4615_v55, 4  ;;  %vm1744_vm14 = vcmp.eq.s32.totalorder %v4615_v55, 5  ;;  %vm1794_vm15 = vcmp.eq.s32.totalorder %v4615_v55, 6 }
 0x312   :  { %v4603_v45 = vpop.permute.xlu1 %1747  ;;  %vm4634_vm8 = vmand %vm1544_vm5, %vm4352_vm2 }
 0x313   :  { %3997 = vset.pattern.permute.xlu1 %v4078_v56  ;;  %vm4648_vm10 = vmand %vm1594_vm7, %vm4352_vm2  ;;  %v1579_v9 = vsel %vm4634_vm8, %v4518_v19, 0.0  ;;  %vm1844_vm7 = vcmp.eq.s32.totalorder %v4615_v55, 7 }
 0x314   :  { %1621 = vperm.xlu1 %3997, %v4410_v50   ;;  %v1633_v35 = vsel %vm4648_vm10, %v1618_v46, 0.0  ;;  %vm4658_vm12 = vmand %vm1644_vm9, %vm4352_vm2  ;;  %v1630_v19 = vsel %vm4648_vm10, %v4592_v8, 0.0 }
 0x315   :  { %vm4666_vm13 = vmand %vm1694_vm11, %vm4352_vm2  ;;  %v1679_v8 = vsel %vm4658_vm12, %v4528_v24, 0.0  ;;  %v1631_v24 = vsel %vm4648_vm10, %v4557_v36, 0.0 }
 0x316   :  { %vm4755_vm4 = vmand %vm1744_vm14, %vm4352_vm2 }
 0x317   :  { %v4610_v13 = vpop.permute.xlu1 %1797  ;;  %vm4768_vm5 = vmand %vm1794_vm15, %vm4352_vm2 }
 0x318   :  { %3999 = vset.pattern.permute.xlu1 %v4079_v57  ;;  %v4640_v57 = vpop.permute.xlu0 %1725  ;;  %vm4786_vm9 = vmand %vm1844_vm7, %vm4352_vm2  ;;  %v1831_v55 = vsel %vm4768_vm5, %v4575_v48, 0.0  ;;  %v1535_v48 = vsel %vm4627_vm6, %v4607_v59, 0.0  ;;  %v1685_v59 = vsel %vm4658_vm12, %v4617_v37, 0.0  ;;  %v1427_v37 = vsub.f32 %v4394_v27, %v4504_v1 }
 0x319   :  { %1721 = vperm.xlu1 %3999, %v4410_v50  }
 0x31c   :  { %v4619_v15 = vpop.permute.xlu1 %1847  ;;  %v4670_v46 = vpop.permute.xlu0 %1613 }
 0x31d   :  { %5370 = vst [vmem:[#allocation4_spill] sm:$0xff] %v4619_v15  ;;  %4000 = vset.pattern.permute.xlu1 %v4075_v52  ;;  %v1583_v52 = vsel %vm4634_vm8, %v1568_v47, 0.0  ;;  %v1632_v27 = vsel %vm4648_vm10, %v4670_v46, 0.0 }
 0x31e   :  { %1771 = vperm.xlu1 %4000, %v4410_v50  }
 0x321   :  { %v1516_v56 = vpop.permute.xlu1 %1515 }
 0x322   :  { %v1533_v18 = vsel %vm4627_vm6, %v1516_v56, 0.0  ;;  %4001 = vset.pattern.permute.xlu1 %v4080_v60 }
 0x323   :  { %v1591_v33 = vadd.f32 %v1583_v52, %v1533_v18  ;;  %1821 = vperm.xlu1 %4001, %v4410_v50   ;;  %v1733_v52 = vsel %vm4666_vm13, %v1718_v2, 0.0  ;;  %v1432_v2 = vmul.f32 1.442695, %v1422_v54 }
 0x325   :  { %v1641_v47 = vadd.f32 %v1633_v35, %v1591_v33  ;;  %v1420_v35 = vsub.f32 %v4364_v5, %v4475_v3 }
 0x326   :  { %v1668_v51 = vpop.permute.xlu1 %1667 }
 0x327   :  { %v1683_v12 = vsel %vm4658_vm12, %v1668_v51, 0.0  ;;  %v4680_v51 = vpop.permute.xlu0 %1663  ;;  %v1428_v44 = vmul.f32 1.442695, %v1420_v35  ;;  %v1629_v35 = vsel %vm4648_vm10, %v4525_v23, 0.0 }
 0x328   :  { %v1691_v56 = vadd.f32 %v1683_v12, %v1641_v47  ;;  %v1425_v12 = vsub.f32 %v4376_v14, %v4488_v6  ;;  %v1529_v6 = vsel %vm4627_vm6, %v4512_v17, 0.0 }
 0x329   :  { %4019 = vpow2.f32 %v1428_v44 }
 0x32a   :  { %v4674_v18 = vadd.f32 %v1733_v52, %v1691_v56  ;;  %4021 = vpow2.f32 %v1432_v2  ;;  %v1438_v56 = vmul.f32 1.442695, %v1425_v12  ;;  %v1587_v12 = vadd.f32 %v1579_v9, %v1529_v6 }
 0x32b   :  { %v4676_v33 = vpop.permute.xlu1 %1767  ;;  %v4686_v15 = vpop.permute.xlu0 %1713  ;;  %v1729_v6 = vsel %vm4666_vm13, %v4532_v25, 0.0  ;;  %v1681_v25 = vsel %vm4658_vm12, %v4563_v41, 0.0 }
 0x32c   :  { %4023 = vpow2.f32 %v1438_v56 }
 0x32f   :  { %v4692_v5 = vpop.permute.xlu0 %1863 }
 0x330   :  { %v4682_v20 = vpop.permute.xlu1 %1817 }
 0x333   :  { %v4697_v4 = vpop.permute.xlu0 %1671 }
 0x335   :  { %v4688_v47 = vpop.permute.xlu1 %1867 }
 0x336   :  { %5381 = vst [vmem:[#allocation5_spill] sm:$0xff] %v4688_v47  ;;  %v4712_v2 = vpop.eup %4019 }
 0x337   :  { %v1444_v23 = vsel %vm1395_vm3, %v4712_v2, 0.0  ;;  %v4725_v47 = vpop.eup %4021 }
 0x33a   :  { %v1501_v3 = vpop.permute.xlu1 %1500 }
 0x33b   :  { %v1530_v44 = vsel %vm4627_vm6, %v1501_v3, 0.0  ;;  %v1680_v3 = vsel %vm4658_vm12, %v4599_v11, 0.0  ;;  %v1581_v11 = vsel %vm4634_vm8, %v4553_v39, 0.0  ;;  %v1450_v39 = vsel %vm1395_vm3, %v4725_v47, 0.0 }
 0x33f   :  { %v1556_v52 = vpop.permute.xlu1 %1555 }
 0x340   :  { %v1580_v54 = vsel %vm4634_vm8, %v1556_v52, 0.0 }
 0x341   :  { %v1588_v14 = vadd.f32 %v1580_v54, %v1530_v44  ;;  %v1637_v44 = vadd.f32 %v1629_v35, %v1587_v12  ;;  %v4721_v54 = vpop.permute.xlu0 %1871  ;;  %v1531_v35 = vsel %vm4627_vm6, %v4546_v30, 0.0  ;;  %v4747_v12 = vpop.eup %4023 }
 0x343   :  { %v1638_v56 = vadd.f32 %v1630_v19, %v1588_v14  ;;  %v1687_v9 = vadd.f32 %v1679_v8, %v1637_v44  ;;  %v1731_v44 = vsel %vm4666_vm13, %v4569_v43, 0.0 }
 0x344   :  { %v4717_v52 = vpop.permute.xlu1 %1705 }
 0x345   :  { %v4719_v17 = vadd.f32 %v1680_v3, %v1638_v56  ;;  %v1589_v56 = vadd.f32 %v1581_v11, %v1531_v35  ;;  %v1737_v36 = vadd.f32 %v1729_v6, %v1687_v9  ;;  %v1459_v11 = vsel %vm1395_vm3, %v4747_v12, 0.0 }
 0x346   :  { %v1779_v9 = vsel %vm4755_vm4, %v4535_v26, 0.0 }
 0x347   :  { %1445 = vadd.xlane.f32.xlu1 %v1444_v23  ;;  %v1639_v3 = vadd.f32 %v1631_v24, %v1589_v56  ;;  %v1787_v43 = vadd.f32 %v1779_v9, %v1737_v36  ;;  %v1829_v24 = vsel %vm4768_vm5, %v4538_v28, 0.0  ;;  %v1879_v28 = vsel %vm4786_vm9, %v4544_v29, 0.0 }
 0x348   :  { %v1881_v9 = vsel %vm4786_vm9, %v4560_v40, 0.0 }
 0x349   :  { %v4734_v14 = vpop.permute.xlu1 %1755  ;;  %v1689_v35 = vadd.f32 %v1681_v25, %v1639_v3  ;;  %v1837_v26 = vadd.f32 %v1829_v24, %v1787_v43 }
 0x34a   :  { %v1449_v19 = vpop.xlane.xlu0 %1448 }
 0x34b   :  { %4025 = vrcp.f32 %v1449_v19  ;;  %1451 = vadd.xlane.f32.xlu1 %v1450_v39  ;;  %v1739_v6 = vadd.f32 %v1731_v44, %v1689_v35  ;;  %v1781_v39 = vsel %vm4755_vm4, %v4551_v38, 0.0  ;;  %v1887_v44 = vadd.f32 %v1879_v28, %v1837_v26 }
 0x34c   :  { %v1424_v28 = vsub.f32 %v4386_v22, %v4522_v21  ;;  %v1682_v22 = vsel %vm4658_vm12, %v4680_v51, 0.0  ;;  %v1882_v51 = vsel %vm4786_vm9, %v4692_v5, 0.0 }
 0x34d   :  { %v1789_v25 = vadd.f32 %v1781_v39, %v1739_v6  ;;  %v5388_v39 = vmov 0.0  }
 0x34e   :  { %v4762_v23 = vpop.permute.xlu1 %1805  ;;  %v1455_v8 = vpop.xlane.xlu0 %1454 }
 0x34f   :  { %4027 = vrcp.f32 %v1455_v8  ;;  %1460 = vadd.xlane.f32.xlu1 %v1459_v11  ;;  %v1839_v38 = vadd.f32 %v1831_v55, %v1789_v25 }
 0x351   :  { %v1889_v43 = vadd.f32 %v1881_v9, %v1839_v38  ;;  %v1732_v9 = vsel %vm4666_vm13, %v4686_v15, 0.0 }
 0x353   :  { %v4779_v19 = vpop.permute.xlu1 %1855 }
 0x358   :  { %v4026_v36 = vpop.eup %4025  ;;  %v1576_v3 = vpop.permute.xlu1 %1575 }
 0x359   :  { %v1471_v63 = vmul.f32 %v4026_v36, %v4502_v58  ;;  %v1585_v8 = vsel %vm4634_vm8, %v1576_v3, 0.0  ;;  %v1442_v3 = vmul.f32 1.442695, %v1427_v37 }
 0x35a   :  { %v1593_v29 = vadd.f32 %v1585_v8, %v1535_v48 }
 0x35b   :  { %v1895_v11 = vadd.f32 %v1887_v44, %v1471_v63  ;;  %4029 = vpow2.f32 %v1442_v3 }
 0x35c   :  { %v4028_v35 = vpop.eup %4027 }
 0x35d   :  { %v1626_v6 = vpop.permute.xlu1 %1625  ;;  %3785 = vmatmul.mubr.msk.f32.vlgmr.msra.gmra.mxu0 %vm1395_vm3, %v1895_v11  ;;  %v1475_v58 = vmul.f32 %v4028_v35, %v4510_v16 }
 0x35e   :  { %v1635_v24 = vsel %vm4648_vm10, %v1626_v6, 0.0  ;;  %3793 = vmatpush3.msra.mxu0 %v4241_v49  ;;  %3794 = vmatprep.mubr.msk.f32.mxu0 %vm4071_vm1, %v5388_v39  ;;  %v1735_v49 = vsel %vm4666_vm13, %v4640_v57, 0.0  ;;  %v1436_v57 = vmul.f32 1.442695, %v1424_v28 }
 0x35f   :  { %v1643_v40 = vadd.f32 %v1635_v24, %v1593_v29  ;;  %v1897_v26 = vadd.f32 %v1889_v43, %v1475_v58  ;;  %3802 = vmatprep.subr.mxu0 %v5388_v39 }
 0x360   :  { %2282 = vrot.lane.b32.xlu1 %v4209_v32, %s4072_s25  ;;  %4031 = vpow2.f32 %v1436_v57 }
 0x361   :  { %v1693_v16 = vadd.f32 %v1685_v59, %v1643_v40  ;;  %3795 = vmatmul.mubr.msk.f32.vlgmr.msra.gmra.mxu0 %vm1395_vm3, %v1897_v26 }
 0x362   :  { %v4822_v25 = vpop.permute.xlu1 %1775  ;;  %3804 = vmatprep.mubr.msk.f32.mxu0 %vm4071_vm1, %v5388_v39 }
 0x363   :  { %v4826_v55 = vadd.f32 %v1735_v49, %v1693_v16 }
 0x367   :  { %v4828_v36 = vpop.permute.xlu1 %1825 }
 0x368   :  { %v4851_v29 = vpop.eup %4029 }
 0x369   :  { %v1465_v40 = vsel %vm1395_vm3, %v4851_v29, 0.0 }
 0x36c   :  { %v4832_v32 = vpop.permute.xlu1 %1875 }
 0x36d   :  { %v4860_v15 = vpop.eup %4031 }
 0x36e   :  { %v1456_v16 = vsel %vm1395_vm3, %v4860_v15, 0.0 }
 0x371   :  { %v1511_v44 = vpop.permute.xlu1 %1510 }
 0x372   :  { %v1532_v63 = vsel %vm4627_vm6, %v1511_v44, 0.0 }
 0x376   :  { %v1564_v38 = vpop.permute.xlu1 %1563 }
 0x377   :  { %v1582_v8 = vsel %vm4634_vm8, %v1564_v38, 0.0  ;;  %v1684_v38 = vsel %vm4658_vm12, %v4697_v4, 0.0  ;;  %v1884_v4 = vsel %vm4786_vm9, %v4721_v54, 0.0  ;;  %v2510_v54 = vld [vmem:[%s5360_s1] sm:$0xff] }
 0x378   :  { %v1590_v11 = vadd.f32 %v1582_v8, %v1532_v63 }
 0x37a   :  { %v1640_v1 = vadd.f32 %v1632_v27, %v1590_v11 }
 0x37b   :  { %v1764_v21 = vpop.permute.xlu1 %1763 }
 0x37c   :  { %v1690_v35 = vadd.f32 %v1682_v22, %v1640_v1  ;;  %v1782_v43 = vsel %vm4755_vm4, %v1764_v21, 0.0 }
 0x37e   :  { %v1740_v48 = vadd.f32 %v1732_v9, %v1690_v35 }
 0x380   :  { %v1790_v6 = vadd.f32 %v1782_v43, %v1740_v48  ;;  %v1814_v58 = vpop.permute.xlu1 %1813 }
 0x381   :  { %v1832_v46 = vsel %vm4768_vm5, %v1814_v58, 0.0  ;;  %v2511_v58 = vld [vmem:[%s5360_s1 + $0x8] sm:$0xff] }
 0x382   :  { %v1840_v24 = vadd.f32 %v1832_v46, %v1790_v6  ;;  %v2513_v6 = vld [vmem:[%s5360_s1 + $0x18] sm:$0xff]  ;;  %v1578_v46 = vsel %vm4634_vm8, %v4581_v53, 0.0  ;;  %v1728_v53 = vsel %vm4666_vm13, %v4595_v10, 0.0 }
 0x383   :  { %2529 = vrot.lane.b32.xlu0 %v2513_v6, %s4081_s30 }
 0x384   :  { %v4862_v26 = vadd.f32 %v1882_v51, %v1840_v24  ;;  %1466 = vadd.xlane.f32.xlu1 %v1465_v40  ;;  %v1528_v51 = vsel %vm4627_vm6, %v4567_v42, 0.0  ;;  %v1628_v40 = vsel %vm4648_vm10, %v4585_v0, 0.0  ;;  %v1778_v42 = vsel %vm4755_vm4, %v4603_v45, 0.0 }
 0x385   :  { %v1521_v59 = vpop.permute.xlu1 %1520  ;;  %v1828_v0 = vsel %vm4768_vm5, %v4610_v13, 0.0  ;;  %v1780_v45 = vsel %vm4755_vm4, %v4734_v14, 0.0  ;;  %v1830_v13 = vsel %vm4768_vm5, %v4762_v23, 0.0  ;;  %v1783_v14 = vsel %vm4755_vm4, %v4676_v33, 0.0 }
 0x386   :  { %v1534_v37 = vsel %vm4627_vm6, %v1521_v59, 0.0  ;;  %v1586_v59 = vadd.f32 %v1578_v46, %v1528_v51  ;;  %v1833_v23 = vsel %vm4768_vm5, %v4682_v20, 0.0 }
 0x387   :  { %2525 = vrot.lane.b32.xlu0 %v2511_v58, %s4081_s30 }
 0x388   :  { %1457 = vadd.xlane.f32.xlu1 %v1456_v16  ;;  %v1678_v16 = vsel %vm4658_vm12, %v4589_v7, 0.0  ;;  %v1730_v7 = vsel %vm4666_vm13, %v4717_v52, 0.0 }
 0x38a   :  { %v1572_v49 = vpop.permute.xlu1 %1571 }
 0x38b   :  { %v1584_v5 = vsel %vm4634_vm8, %v1572_v49, 0.0 }
 0x38c   :  { %v1592_v28 = vadd.f32 %v1584_v5, %v1534_v37  ;;  %v1636_v37 = vadd.f32 %v1628_v40, %v1586_v59  ;;  %v5389_v5 = vld [vmem:[#allocation4_spill] sm:$0xff] }
 0x38d   :  { %v1878_v10 = vsel %vm4786_vm9, %v5389_v5, 0.0 }
 0x38e   :  { %v1686_v61 = vadd.f32 %v1678_v16, %v1636_v37 }
 0x38f   :  { %v1622_v3 = vpop.permute.xlu1 %1621 }
 0x390   :  { %v1634_v44 = vsel %vm4648_vm10, %v1622_v3, 0.0  ;;  %v1736_v31 = vadd.f32 %v1728_v53, %v1686_v61 }
 0x391   :  { %v1642_v57 = vadd.f32 %v1634_v44, %v1592_v28  ;;  %v1738_v44 = vadd.f32 %v1730_v7, %v4719_v17  ;;  %v1880_v17 = vsel %vm4786_vm9, %v4779_v19, 0.0 }
 0x392   :  { %v1786_v60 = vadd.f32 %v1778_v42, %v1736_v31  ;;  %v5392_v42 = vld [vmem:[#allocation3_spill] sm:$0xff] }
 0x393   :  { %v1692_v63 = vadd.f32 %v1684_v38, %v1642_v57  ;;  %v1788_v52 = vadd.f32 %v1780_v45, %v1738_v44 }
 0x394   :  { %v1722_v8 = vpop.permute.xlu1 %1721  ;;  %v1836_v3 = vadd.f32 %v1828_v0, %v1786_v60  ;;  %v3530_v0 = vld [vmem:[%s5360_s1 + $0xc0] ss:$0 sm:$0xff] }
 0x395   :  { %v1734_v11 = vsel %vm4666_vm13, %v1722_v8, 0.0  ;;  %2536 = vrot.lane.b32.xlu0 %v3530_v0, %s4081_s30 }
 0x396   :  { %v1742_v27 = vadd.f32 %v1734_v11, %v1692_v63  ;;  %v1886_v50 = vadd.f32 %v1878_v10, %v1836_v3  ;;  %v1838_v63 = vadd.f32 %v1830_v13, %v1788_v52 }
 0x399   :  { %v1772_v1 = vpop.permute.xlu1 %1771  ;;  %2434 = vrot.lane.b32.xlu1 %v4215_v34, %s4072_s25  ;;  %v2512_v34 = vld [vmem:[%s5360_s1 + $0x10] sm:$0xff] }
 0x39a   :  { %v1784_v22 = vsel %vm4755_vm4, %v1772_v1, 0.0  ;;  %v1888_v1 = vadd.f32 %v1880_v17, %v1838_v63  ;;  %v4061_v63 = vld [vmem:[%s5361_s0 + $0x8] sm:$0xff] }
 0x39b   :  { %v1792_v21 = vadd.f32 %v1784_v22, %v1742_v27  ;;  %v1791_v27 = vadd.f32 %v1783_v14, %v4674_v18  ;;  %v5390_v22 = vld [vmem:[#allocation5_spill] sm:$0xff] }
 0x39c   :  { %v1883_v33 = vsel %vm4786_vm9, %v5390_v22, 0.0 }
 0x39d   :  { %2527 = vrot.lane.b32.xlu1 %v2512_v34, %s4081_s30  ;;  %v1841_v19 = vadd.f32 %v1833_v23, %v1791_v27 }
 0x39e   :  { %v1822_v35 = vpop.permute.xlu1 %1821 }
 0x39f   :  { %v1834_v9 = vsel %vm4768_vm5, %v1822_v35, 0.0  ;;  %v1891_v18 = vadd.f32 %v1883_v33, %v1841_v19 }
 0x3a0   :  { %v1842_v48 = vadd.f32 %v1834_v9, %v1792_v21  ;;  %v5391_v21 = vld [vmem:[#allocation2_spill] sm:$0xff]  ;;  %v2207_v9 = vpop.permute.xlu0 %2206 }
 0x3a1   :  { %2523 = vrot.lane.b32.xlu1 %v2510_v54, %s4081_s30  ;;  %v1835_v54 = vsel %vm4768_vm5, %v4828_v36, 0.0  ;;  %s4083_s30 = smov 1  }
 0x3a2   :  { %v4886_v43 = vadd.f32 %v1884_v4, %v1842_v48 }
 0x3a4   :  { %v1464_v6 = vpop.xlane.xlu0 %1463 }
 0x3a8   :  { %v2359_v37 = vpop.permute.xlu0 %2358 }
 0x3d0   :  { %v1446_v24 = vpop.xlane.xlu1 %1445 }
 0x3d1   :  { %4033 = vrcp.f32 %v1446_v24  ;;  %v1885_v24 = vsel %vm4786_vm9, %v4832_v32, 0.0 }
 0x3d4   :  { %v1452_v49 = vpop.xlane.xlu1 %1451 }
 0x3d5   :  { %4035 = vrcp.f32 %v1452_v49 }
 0x3d8   :  { %v1461_v62 = vpop.xlane.xlu1 %1460 }
 0x3d9   :  { %4037 = vrcp.f32 %v1461_v62 }
 0x3dc   :  { %v2283_v28 = vpop.permute.xlu1 %2282 }
 0x3dd   :  { %3803 = vmatpush3.msra.mxu0 %v2283_v28 }
 0x3de   :  { %v4034_v57 = vpop.eup %4033  ;;  %3812 = vmatprep.subr.mxu0 %v5388_v39 }
 0x3df   :  { %v1469_v38 = vmul.f32 %v4034_v57, %v4712_v2 }
 0x3e1   :  { %v1894_v8 = vadd.f32 %v1886_v50, %v1469_v38 }
 0x3e2   :  { %v4036_v11 = vpop.eup %4035 }
 0x3e3   :  { %3780 = vmatmul.mubr.msk.f32.vlgmr.msra.gmra.mxu1 %vm1395_vm3, %v1894_v8  ;;  %v1473_v2 = vmul.f32 %v4036_v11, %v4725_v47  ;;  %v4062_v11 = vld [vmem:[%s5361_s0] sm:$0xff] }
 0x3e4   :  { %3788 = vmatpush3.msra.mxu1 %v5391_v21  ;;  %3789 = vmatprep.mubr.msk.f32.mxu1 %vm4071_vm1, %v5388_v39 }
 0x3e5   :  { %3797 = vmatprep.subr.mxu1 %v5388_v39  ;;  %v1896_v20 = vadd.f32 %v1888_v1, %v1473_v2 }
 0x3e6   :  { %v4038_v35 = vpop.eup %4037 }
 0x3e7   :  { %3790 = vmatmul.mubr.msk.f32.vlgmr.msra.gmra.mxu1 %vm1395_vm3, %v1896_v20  ;;  %v1479_v47 = vmul.f32 %v4038_v35, %v4747_v12  ;;  %v1785_v12 = vsel %vm4755_vm4, %v4822_v25, 0.0  ;;  %v4063_v35 = vld [vmem:[%s5361_s0 + $0x18] sm:$0xff] }
 0x3e8   :  { %3798 = vmatpush3.msra.mxu1 %v2207_v9  ;;  %3799 = vmatprep.mubr.msk.f32.mxu1 %vm4071_vm1, %v5388_v39  ;;  %v1793_v46 = vadd.f32 %v1785_v12, %v4826_v55 }
 0x3e9   :  { %v1899_v48 = vadd.f32 %v1891_v18, %v1479_v47  ;;  %3807 = vmatprep.subr.mxu1 %v5388_v39 }
 0x3ea   :  { %v1843_v51 = vadd.f32 %v1835_v54, %v1793_v46  ;;  %v4065_v46 = vld [vmem:[%s5361_s0 + $0x28] sm:$0xff] }
 0x3eb   :  { %3805 = vmatmul.mubr.msk.f32.vlgmr.msra.gmra.mxu0 %vm1395_vm3, %v1899_v48  ;;  %v4064_v48 = vld [vmem:[%s5361_s0 + $0x10] sm:$0xff] }
 0x3ec   :  { %3814 = vmatprep.mubr.msk.f32.mxu0 %vm4071_vm1, %v5388_v39  ;;  %v1893_v59 = vadd.f32 %v1885_v24, %v1843_v51 }
 0x3f5   :  { %v2530_v32 = vpop.permute.xlu0 %2529 }
 0x40d   :  { %v1467_v4 = vpop.xlane.xlu1 %1466 }
 0x40e   :  { %4039 = vrcp.f32 %v1467_v4 }
 0x411   :  { %v1458_v34 = vpop.xlane.xlu1 %1457 }
 0x412   :  { %4041 = vrcp.f32 %v1458_v34 }
 0x413   :  { %4043 = vrcp.f32 %v1464_v6 }
 0x415   :  { %v2435_v58 = vpop.permute.xlu1 %2434 }
 0x416   :  { %3813 = vmatpush3.msra.mxu0 %v2435_v58 }
 0x41b   :  { %v4040_v40 = vpop.eup %4039 }
 0x41c   :  { %v1483_v16 = vmul.f32 %v4040_v40, %v4851_v29  ;;  %v2528_v29 = vpop.permute.xlu1 %2527  ;;  %v4066_v40 = vld [vmem:[%s5361_s0 + $0x20] sm:$0xff] }
 0x41d   :  { %v2050_v49 = vpop.f32.mrf.mxu0 }
 0x41e   :  { %v1901_v30 = vadd.f32 %v1893_v59, %v1483_v16 }
 0x41f   :  { %v4042_v25 = vpop.eup %4041  ;;  %v3786_v53 = vpop.f32.mrf.mxu0 }
 0x420   :  { %3815 = vmatmul.mubr.msk.f32.vlgmr.msra.gmra.mxu0 %vm1395_vm3, %v1901_v30  ;;  %v1477_v41 = vmul.f32 %v4042_v25, %v4860_v15  ;;  %v4044_v36 = vpop.eup %4043  ;;  %v2526_v15 = vpop.permute.xlu0 %2525 }
 0x421   :  { %v2202_v55 = vpop.f32.mrf.mxu0  ;;  %v1481_v62 = vmul.f32 %v4044_v36, %v5392_v42 }
 0x422   :  { %v1898_v61 = vadd.f32 %v4862_v26, %v1477_v41  ;;  %v2524_v26 = vpop.permute.xlu1 %2523 }
 0x423   :  { %v3796_v56 = vpop.f32.mrf.mxu0  ;;  %v1900_v31 = vadd.f32 %v4886_v43, %v1481_v62 }
 0x424   :  { %3800 = vmatmul.mubr.msk.f32.vlgmr.msra.gmra.mxu1 %vm1395_vm3, %v1898_v61  ;;  %v2537_v50 = vpop.permute.xlu0 %2536 }
 0x425   :  { %3808 = vmatpush3.msra.mxu1 %v2359_v37  ;;  %3809 = vmatprep.mubr.msk.f32.mxu1 %vm4071_vm1, %v5388_v39 }
 0x426   :  { %3817 = vmatprep.subr.mxu1 %v2530_v32 }
 0x428   :  { %3810 = vmatmul.mubr.msk.f32.vlgmr.msra.gmra.mxu1 %vm1395_vm3, %v1900_v31 }
 0x429   :  { %3818 = vmatpush3.msra.mxu1 %v2530_v32  ;;  %v4067_v32 = vld [vmem:[%s5361_s0 + $0x38] sm:$0xff] }
 0x42a   :  { %3819 = vmatprep.subr.mxu1 %v2528_v29 }
 0x42b   :  { %3820 = vmatpush3.msra.mxu1 %v2528_v29 }
 0x42c   :  { %3821 = vmatprep.subr.mxu1 %v2526_v15 }
 0x42d   :  { %3822 = vmatpush3.msra.mxu1 %v2526_v15  ;;  %v4068_v15 = vld [vmem:[%s5361_s0 + $0x30] sm:$0xff] }
 0x42e   :  { %3823 = vmatprep.subr.mxu1 %v2524_v26 }
 0x42f   :  { %3824 = vmatpush3.msra.mxu1 %v2524_v26 }
 0x4a3   :  { %v1974_v39 = vpop.f32.mrf.mxu1 }
 0x4a4   :  { %3825 = vmatprep.mubr.msk.f32.mxu1 %vm28_vm0, %v1974_v39 }
 0x4a5   :  { %v3781_v43 = vpop.f32.mrf.mxu1  ;;  %3826 = vmatmul.mubr.msk.f32.vlgmr.msra.gmra.mxu1 %vm28_vm0, %v2050_v49 }
 0x4a7   :  { %v2126_v7 = vpop.f32.mrf.mxu1 }
 0x4a8   :  { %3828 = vmatprep.mubr.msk.f32.mxu1 %vm28_vm0, %v2126_v7 }
 0x4a9   :  { %v3791_v60 = vpop.f32.mrf.mxu1  ;;  %3829 = vmatmul.mubr.msk.f32.gmra.mxu1 %vm28_vm0, %v2202_v55 }
 0x4ab   :  { %v2354_v5 = vpop.f32.mrf.mxu0 }
 0x4ad   :  { %v3806_v10 = vpop.f32.mrf.mxu0 }
 0x4ae   :  { %v4082_v10 = vmov 96  }
 0x4af   :  { %4003 = vset.pattern.permute.xlu1 %v4082_v10  ;;  %4004 = vset.pattern.permute.xlu0 %v4082_v10 }
 0x4e0   :  { %v2506_v45 = vpop.f32.mrf.mxu0 }
 0x4e2   :  { %v3816_v28 = vpop.f32.mrf.mxu0 }
 0x4e4   :  { %v2278_v3 = vpop.f32.mrf.mxu1 }
 0x4e5   :  { %3831 = vmatprep.mubr.msk.f32.mxu1 %vm28_vm0, %v2278_v3 }
 0x4e6   :  { %v3801_v44 = vpop.f32.mrf.mxu1  ;;  %3832 = vmatmul.mubr.msk.f32.gmra.mxu1 %vm28_vm0, %v2354_v5 }
 0x4e8   :  { %v2430_v57 = vpop.f32.mrf.mxu1 }
 0x4e9   :  { %3834 = vmatprep.mubr.msk.f32.mxu1 %vm28_vm0, %v2430_v57 }
 0x4ea   :  { %v3811_v13 = vpop.f32.mrf.mxu1  ;;  %3835 = vmatmul.mubr.msk.f32.gmra.mxu1 %vm28_vm0, %v2506_v45 }
 0x565   :  { %v3827_v52 = vpop.f32.mrf.mxu1 }
 0x566   :  { %v2635_v38 = vadd.f32 %v3827_v52, %v2537_v50 }
 0x567   :  { %v2629_v14 = vpop.f32.mrf.mxu1 }
 0x568   :  { %v2630_v17 = vadd.f32 %v2629_v14, %v2537_v50  ;;  %v5002_v8 = vadd.f32 %v4061_v63, %v2635_v38 }
 0x569   :  { %v3830_v2 = vpop.f32.mrf.mxu1 }
 0x56a   :  { %v5007_v23 = vadd.f32 %v4062_v11, %v2630_v17  ;;  %v2683_v27 = vsel %vm28_vm0, %v5002_v8, 0.0  ;;  %v2705_v1 = vmul.f32 %v5002_v8, %v5002_v8  ;;  %v2645_v33 = vadd.f32 %v3830_v2, %v2537_v50 }
 0x56b   :  { %2684 = vadd.xlane.f32.xlu0 %v2683_v27  ;;  %v2639_v20 = vpop.f32.mrf.mxu1 }
 0x56c   :  { %v2680_v22 = vsel %vm28_vm0, %v5007_v23, 0.0  ;;  %v2715_v21 = vsel %vm28_vm0, %v2705_v1, 0.0  ;;  %v2704_v19 = vmul.f32 %v5007_v23, %v5007_v23  ;;  %v5021_v18 = vadd.f32 %v4063_v35, %v2645_v33 }
 0x56d   :  { %2681 = vadd.xlane.f32.xlu1 %v2680_v22  ;;  %v2640_v9 = vadd.f32 %v2639_v20, %v2537_v50 }
 0x56e   :  { %v2712_v47 = vsel %vm28_vm0, %v2704_v19, 0.0  ;;  %v2689_v6 = vsel %vm28_vm0, %v5021_v18, 0.0  ;;  %v2707_v56 = vmul.f32 %v5021_v18, %v5021_v18 }
 0x56f   :  { %2716 = vadd.xlane.f32.xlu0 %v2715_v21  ;;  %v5027_v4 = vadd.f32 %v4064_v48, %v2640_v9 }
 0x570   :  { %v2721_v31 = vsel %vm28_vm0, %v2707_v56, 0.0 }
 0x571   :  { %v2686_v34 = vsel %vm28_vm0, %v5027_v4, 0.0  ;;  %v2706_v37 = vmul.f32 %v5027_v4, %v5027_v4 }
 0x573   :  { %2713 = vadd.xlane.f32.xlu0 %v2712_v47  ;;  %v2718_v61 = vsel %vm28_vm0, %v2706_v37, 0.0  ;;  %v5084_v37 = vld [vmem:[%s5360_s1 + $0x48] sm:$0xff] }
 0x577   :  { %2690 = vadd.xlane.f32.xlu0 %v2689_v6 }
 0x57b   :  { %2687 = vadd.xlane.f32.xlu0 %v2686_v34 }
 0x5a6   :  { %v3833_v12 = vpop.f32.mrf.mxu1 }
 0x5a7   :  { %v2655_v58 = vadd.f32 %v3833_v12, %v2537_v50 }
 0x5a8   :  { %v2649_v54 = vpop.f32.mrf.mxu1 }
 0x5a9   :  { %v5036_v24 = vadd.f32 %v4065_v46, %v2655_v58  ;;  %v2650_v51 = vadd.f32 %v2649_v54, %v2537_v50 }
 0x5aa   :  { %v3836_v30 = vpop.f32.mrf.mxu1 }
 0x5ab   :  { %v5041_v59 = vadd.f32 %v4066_v40, %v2650_v51  ;;  %v2695_v16 = vsel %vm28_vm0, %v5036_v24, 0.0  ;;  %v2709_v49 = vmul.f32 %v5036_v24, %v5036_v24  ;;  %v2665_v53 = vadd.f32 %v3836_v30, %v2537_v50 }
 0x5ac   :  { %2696 = vadd.xlane.f32.xlu1 %v2695_v16  ;;  %v2659_v55 = vpop.f32.mrf.mxu1 }
 0x5ad   :  { %v2692_v25 = vsel %vm28_vm0, %v5041_v59, 0.0  ;;  %v2727_v41 = vsel %vm28_vm0, %v2709_v49, 0.0  ;;  %v2708_v36 = vmul.f32 %v5041_v59, %v5041_v59  ;;  %v5060_v42 = vadd.f32 %v4067_v32, %v2665_v53 }
 0x5ae   :  { %2693 = vadd.xlane.f32.xlu0 %v2692_v25  ;;  %v2660_v62 = vadd.f32 %v2659_v55, %v2537_v50 }
 0x5af   :  { %v2724_v29 = vsel %vm28_vm0, %v2708_v36, 0.0  ;;  %v2701_v0 = vsel %vm28_vm0, %v5060_v42, 0.0  ;;  %v2711_v60 = vmul.f32 %v5060_v42, %v5060_v42 }
 0x5b0   :  { %2728 = vadd.xlane.f32.xlu1 %v2727_v41  ;;  %v5067_v26 = vadd.f32 %v4068_v15, %v2660_v62  ;;  %v5090_v62 = vld [vmem:[%s5360_s1 + $0x40] sm:$0xff] }
 0x5b1   :  { %v2733_v5 = vsel %vm28_vm0, %v2711_v60, 0.0 }
 0x5b2   :  { %2719 = vadd.xlane.f32.xlu0 %v2718_v61  ;;  %v2698_v39 = vsel %vm28_vm0, %v5067_v26, 0.0  ;;  %v2710_v43 = vmul.f32 %v5067_v26, %v5067_v26 }
 0x5b4   :  { %2725 = vadd.xlane.f32.xlu1 %v2724_v29  ;;  %v2730_v7 = vsel %vm28_vm0, %v2710_v43, 0.0 }
 0x5b6   :  { %2722 = vadd.xlane.f32.xlu0 %v2721_v31 }
 0x5b8   :  { %2702 = vadd.xlane.f32.xlu1 %v2701_v0 }
 0x5bc   :  { %2699 = vadd.xlane.f32.xlu1 %v2698_v39 }
 0x5c0   :  { %2731 = vadd.xlane.f32.xlu1 %v2730_v7  ;;  %v5098_v7 = vld [vmem:[%s5360_s1 + $0x50] sm:$0xff] }
 0x5c4   :  { %2734 = vadd.xlane.f32.xlu1 %v2733_v5 }
 0x5f4   :  { %v2685_v45 = vpop.xlane.xlu0 %2684 }
 0x5f6   :  { %v2682_v57 = vpop.xlane.xlu1 %2681 }
 0x5f8   :  { %v2717_v28 = vpop.xlane.xlu0 %2716 }
 0x5fc   :  { %v2714_v3 = vpop.xlane.xlu0 %2713 }
 0x600   :  { %v2691_v44 = vpop.xlane.xlu0 %2690 }
 0x604   :  { %v2688_v13 = vpop.xlane.xlu0 %2687 }
 0x635   :  { %v2697_v50 = vpop.xlane.xlu1 %2696 }
 0x636   :  { %v2737_v52 = vadd.f32 %v2697_v50, %v2685_v45  ;;  %v5104_v45 = vld [vmem:[%s5360_s1 + $0x58] sm:$0xff] }
 0x637   :  { %v2694_v38 = vpop.xlane.xlu0 %2693  ;;  %v2855_v50 = vld [vmem:[%s5360_s1 + $0x38] sm:$0xff] }
 0x638   :  { %v2745_v14 = vmul.f32 0.015625, %v2737_v52  ;;  %v2736_v17 = vadd.f32 %v2694_v38, %v2682_v57  ;;  %3837 = vmatprep.subr.mxu0 %v2855_v50  ;;  %v2854_v52 = vld [vmem:[%s5360_s1 + $0x30] sm:$0xff]  ;;  %v2853_v38 = vld [vmem:[%s5360_s1 + $0x28] sm:$0xff] }
 0x639   :  { %v2729_v63 = vpop.xlane.xlu1 %2728  ;;  %3838 = vmatpush3.msra.mxu0 %v2855_v50 }
 0x63a   :  { %v2741_v11 = vadd.f32 %v2729_v63, %v2717_v28  ;;  %v2753_v27 = vmul.f32 %v2745_v14, %v2745_v14  ;;  %v2744_v1 = vmul.f32 0.015625, %v2736_v17  ;;  %3839 = vmatprep.subr.mxu0 %v2854_v52  ;;  %v2852_v63 = vld [vmem:[%s5360_s1 + $0x20] sm:$0xff] }
 0x63b   :  { %v2720_v12 = vpop.xlane.xlu0 %2719  ;;  %3840 = vmatpush3.msra.mxu0 %v2854_v52 }
 0x63c   :  { %v2749_v2 = vmul.f32 0.015625, %v2741_v11  ;;  %v2752_v19 = vmul.f32 %v2744_v1, %v2744_v1  ;;  %3841 = vmatprep.subr.mxu0 %v2853_v38 }
 0x63d   :  { %v2726_v22 = vpop.xlane.xlu1 %2725  ;;  %3842 = vmatpush3.msra.mxu0 %v2853_v38 }
 0x63e   :  { %v2757_v33 = vsub.f32 %v2749_v2, %v2753_v27  ;;  %v2740_v21 = vadd.f32 %v2726_v22, %v2714_v3  ;;  %3843 = vmatprep.subr.mxu0 %v2852_v63 }
 0x63f   :  { %v2723_v30 = vpop.xlane.xlu0 %2722  ;;  %3844 = vmatpush3.msra.mxu0 %v2852_v63 }
 0x640   :  { %v2761_v20 = vadd.f32 1e-05, %v2757_v33  ;;  %v2748_v35 = vmul.f32 0.015625, %v2740_v21  ;;  %v3029_v21 = vld [vmem:[%s5360_s1 + $0xb8] sm:$0xff] }
 0x641   :  { %v2703_v9 = vpop.xlane.xlu1 %2702  ;;  %3857 = vmatprep.subr.mxu1 %v3029_v21 }
 0x642   :  { %4045 = vrsqrt.f32 %v2761_v20  ;;  %v2756_v47 = vsub.f32 %v2748_v35, %v2752_v19  ;;  %v2739_v58 = vadd.f32 %v2703_v9, %v2691_v44  ;;  %v3028_v19 = vld [vmem:[%s5360_s1 + $0xb0] sm:$0xff]  ;;  %3858 = vmatpush3.msra.mxu1 %v3029_v21  ;;  %v3026_v20 = vld [vmem:[%s5360_s1 + $0xa0] sm:$0xff]  ;;  %v3025_v35 = vld [vmem:[%s5360_s1 + $0x98] sm:$0xff] }
 0x643   :  { %3859 = vmatprep.subr.mxu1 %v3028_v19  ;;  %v3024_v9 = vld [vmem:[%s5360_s1 + $0x90] sm:$0xff] }
 0x644   :  { %v2760_v48 = vadd.f32 1e-05, %v2756_v47  ;;  %v2747_v40 = vmul.f32 0.015625, %v2739_v58  ;;  %3860 = vmatpush3.msra.mxu1 %v3028_v19  ;;  %v3023_v47 = vld [vmem:[%s5360_s1 + $0x88] sm:$0xff]  ;;  %v3018_v58 = vld [vmem:[%s5360_s1 + $0x60] sm:$0xff] }
 0x645   :  { %v2700_v6 = vpop.xlane.xlu1 %2699 }
 0x646   :  { %4047 = vrsqrt.f32 %v2760_v48  ;;  %v2738_v34 = vadd.f32 %v2700_v6, %v2688_v13  ;;  %v2755_v55 = vmul.f32 %v2747_v40, %v2747_v40  ;;  %v4084_v13 = vmov 97   ;;  %v3022_v48 = vld [vmem:[%s5360_s1 + $0x80] sm:$0xff]  ;;  %v3021_v6 = vld [vmem:[%s5360_s1 + $0x78] sm:$0xff] }
 0x648   :  { %v2746_v54 = vmul.f32 0.015625, %v2738_v34  ;;  %v3020_v34 = vld [vmem:[%s5360_s1 + $0x70] sm:$0xff] }
 0x649   :  { %v2732_v46 = vpop.xlane.xlu1 %2731 }
 0x64a   :  { %v2742_v51 = vadd.f32 %v2732_v46, %v2720_v12  ;;  %v2754_v16 = vmul.f32 %v2746_v54, %v2746_v54  ;;  %v3019_v12 = vld [vmem:[%s5360_s1 + $0x68] sm:$0xff] }
 0x64c   :  { %v2750_v49 = vmul.f32 0.015625, %v2742_v51 }
 0x64d   :  { %v2735_v25 = vpop.xlane.xlu1 %2734 }
 0x64e   :  { %v2758_v53 = vsub.f32 %v2750_v49, %v2754_v16  ;;  %v2743_v41 = vadd.f32 %v2735_v25, %v2723_v30 }
 0x64f   :  { %v4046_v36 = vpop.eup %4045 }
 0x650   :  { %v2762_v61 = vadd.f32 1e-05, %v2758_v53  ;;  %v2751_v56 = vmul.f32 0.015625, %v2743_v41  ;;  %v2769_v32 = vmul.f32 %v4046_v36, %v5084_v37 }
 0x652   :  { %4049 = vrsqrt.f32 %v2762_v61  ;;  %v2759_v29 = vsub.f32 %v2751_v56, %v2755_v55  ;;  %v2773_v31 = vmul.f32 %v2769_v32, %v2745_v14 }
 0x653   :  { %v4048_v15 = vpop.eup %4047 }
 0x654   :  { %v2763_v0 = vadd.f32 1e-05, %v2759_v29  ;;  %2782 = vrot.lane.b32.xlu1 %v2773_v31, %s4083_s30  ;;  %v2768_v39 = vmul.f32 %v4048_v15, %v5090_v62 }
 0x656   :  { %4051 = vrsqrt.f32 %v2763_v0  ;;  %v2772_v43 = vmul.f32 %v2768_v39, %v2744_v1 }
 0x658   :  { %2780 = vrot.lane.b32.xlu0 %v2772_v43, %s4083_s30 }
 0x65f   :  { %v4050_v60 = vpop.eup %4049 }
 0x660   :  { %v2770_v5 = vmul.f32 %v4050_v60, %v5098_v7 }
 0x662   :  { %v2774_v28 = vmul.f32 %v2770_v5, %v2746_v54 }
 0x663   :  { %v4052_v3 = vpop.eup %4051 }
 0x664   :  { %2784 = vrot.lane.b32.xlu1 %v2774_v28, %s4083_s30  ;;  %v2771_v44 = vmul.f32 %v4052_v3, %v5104_v45 }
 0x666   :  { %v2775_v57 = vmul.f32 %v2771_v44, %v2747_v40 }
 0x668   :  { %2798 = vperm.xlu1 %4003, %v2768_v39   ;;  %2786 = vrot.lane.b32.xlu0 %v2775_v57, %s4083_s30 }
 0x66c   :  { %2803 = vperm.xlu0 %4004, %v2769_v32   ;;  %4005 = vset.pattern.permute.xlu1 %v4084_v13 }
 0x670   :  { %2808 = vperm.xlu0 %4004, %v2770_v5  }
 0x674   :  { %4007 = vset.pattern.permute.xlu0 %v4084_v13 }
 0x6c6   :  { %v2783_v14 = vpop.permute.xlu1 %2782 }
 0x6c7   :  { %v2793_v17 = vsub.f32 %v5084_v37, %v2783_v14 }
 0x6c9   :  { %2831 = vperm.xlu1 %4005, %v2793_v17  }
 0x6ca   :  { %v2781_v11 = vpop.permute.xlu0 %2780 }
 0x6cb   :  { %v2792_v27 = vsub.f32 %v5090_v62, %v2781_v11 }
 0x6cd   :  { %2826 = vperm.xlu1 %4005, %v2792_v27  }
 0x6d1   :  { %4006 = vset.pattern.permute.xlu1 %v4082_v10  ;;  %v3027_v10 = vld [vmem:[%s5360_s1 + $0xa8] sm:$0xff] }
 0x6d2   :  { %2813 = vperm.xlu1 %4006, %v2771_v44   ;;  %3861 = vmatprep.subr.mxu1 %v3027_v10 }
 0x6d3   :  { %3862 = vmatpush3.msra.mxu1 %v3027_v10 }
 0x6d4   :  { %3863 = vmatprep.subr.mxu1 %v3026_v20 }
 0x6d5   :  { %3864 = vmatpush3.msra.mxu1 %v3026_v20 }
 0x6d6   :  { %v2785_v1 = vpop.permute.xlu1 %2784  ;;  %4008 = vset.pattern.permute.xlu1 %v4084_v13  ;;  %3865 = vmatprep.subr.mxu1 %v3025_v35 }
 0x6d7   :  { %v2794_v2 = vsub.f32 %v5098_v7, %v2785_v1  ;;  %3866 = vmatpush3.msra.mxu1 %v3025_v35 }
 0x6d8   :  { %3867 = vmatprep.subr.mxu1 %v3024_v9 }
 0x6d9   :  { %2836 = vperm.xlu0 %4007, %v2794_v2   ;;  %3868 = vmatpush3.msra.mxu1 %v3024_v9 }
 0x6da   :  { %v2787_v22 = vpop.permute.xlu0 %2786  ;;  %3869 = vmatprep.subr.mxu1 %v3023_v47 }
 0x6db   :  { %v2795_v33 = vsub.f32 %v5104_v45, %v2787_v22  ;;  %3870 = vmatpush3.msra.mxu1 %v3023_v47 }
 0x6dc   :  { %3871 = vmatprep.subr.mxu1 %v3022_v48 }
 0x6dd   :  { %2841 = vperm.xlu1 %4008, %v2795_v33   ;;  %3872 = vmatpush3.msra.mxu1 %v3022_v48 }
 0x6de   :  { %3873 = vmatprep.subr.mxu1 %v3021_v6 }
 0x6df   :  { %3874 = vmatpush3.msra.mxu1 %v3021_v6 }
 0x6e0   :  { %3875 = vmatprep.subr.mxu1 %v3020_v34 }
 0x6e1   :  { %3876 = vmatpush3.msra.mxu1 %v3020_v34  ;;  %v5216_v34 = vld [vmem:[%s5360_s1 + $0xc2] ss:$0 sm:$0xff] }
 0x6e2   :  { %3877 = vmatprep.subr.mxu1 %v3019_v12 }
 0x6e3   :  { %3878 = vmatpush3.msra.mxu1 %v3019_v12  ;;  %v2799_v54 = vpop.permute.xlu1 %2798 }
 0x6e4   :  { %3879 = vmatprep.subr.mxu1 %v3018_v58  ;;  %v2816_v40 = vmul.f32 %v2799_v54, %v5007_v23  ;;  %v2820_v23 = vmul.f32 %v2799_v54, %v5041_v59 }
 0x6e5   :  { %3880 = vmatpush3.msra.mxu1 %v3018_v58 }
 0x6e6   :  { %3881 = vmatprep.subr.mxu1 %v5104_v45 }
 0x6e7   :  { %3882 = vmatpush3.msra.mxu1 %v5104_v45  ;;  %v2804_v51 = vpop.permute.xlu0 %2803 }
 0x6e8   :  { %3883 = vmatprep.subr.mxu1 %v5098_v7  ;;  %v2817_v16 = vmul.f32 %v2804_v51, %v5002_v8  ;;  %v2821_v31 = vmul.f32 %v2804_v51, %v5036_v24 }
 0x6e9   :  { %3884 = vmatpush3.msra.mxu1 %v5098_v7 }
 0x6ea   :  { %3885 = vmatprep.subr.mxu1 %v5084_v37 }
 0x6eb   :  { %3886 = vmatpush3.msra.mxu1 %v5084_v37  ;;  %v2809_v53 = vpop.permute.xlu0 %2808 }
 0x6ec   :  { %3887 = vmatprep.subr.mxu1 %v5090_v62  ;;  %v2818_v41 = vmul.f32 %v2809_v53, %v5027_v4  ;;  %v2822_v4 = vmul.f32 %v2809_v53, %v5067_v26  ;;  %v3539_v26 = vld [vmem:[%s5360_s1 + $0xc1] ss:$0 sm:$0xff] }
 0x6ed   :  { %3888 = vmatpush3.msra.mxu1 %v5090_v62 }
 0x744   :  { %v2832_v46 = vpop.permute.xlu1 %2831 }
 0x745   :  { %v5174_v25 = vadd.f32 %v2832_v46, %v2817_v16 }
 0x748   :  { %v2827_v49 = vpop.permute.xlu1 %2826 }
 0x749   :  { %v5172_v30 = vadd.f32 %v2827_v49, %v2816_v40  ;;  %v5189_v29 = vadd.f32 %v2827_v49, %v2820_v23 }
 0x74b   :  { %3845 = vmatprep.mubr.msk.f32.mxu0 %vm28_vm0, %v5172_v30 }
 0x74c   :  { %3846 = vmatmul.mubr.msk.f32.vlgmr.msra.gmra.mxu0 %vm28_vm0, %v5174_v25 }
 0x74d   :  { %v2814_v36 = vpop.permute.xlu1 %2813 }
 0x74e   :  { %v2819_v8 = vmul.f32 %v2814_v36, %v5021_v18  ;;  %v5197_v18 = vadd.f32 %v2832_v46, %v2821_v31  ;;  %v2823_v59 = vmul.f32 %v2814_v36, %v5060_v42 }
 0x754   :  { %v2837_v55 = vpop.permute.xlu0 %2836 }
 0x755   :  { %v5181_v61 = vadd.f32 %v2837_v55, %v2818_v41  ;;  %v5199_v15 = vadd.f32 %v2837_v55, %v2822_v4 }
 0x757   :  { %3848 = vmatprep.mubr.msk.f32.mxu0 %vm28_vm0, %v5181_v61 }
 0x758   :  { %v2842_v56 = vpop.permute.xlu1 %2841 }
 0x759   :  { %v5187_v32 = vadd.f32 %v2842_v56, %v2819_v8  ;;  %v5206_v24 = vadd.f32 %v2842_v56, %v2823_v59 }
 0x75b   :  { %3849 = vmatmul.mubr.msk.f32.gmra.mxu0 %vm28_vm0, %v5187_v32 }
 0x75c   :  { %3851 = vmatprep.mubr.msk.f32.mxu0 %vm28_vm0, %v5189_v29 }
 0x75f   :  { %3852 = vmatmul.mubr.msk.f32.gmra.mxu0 %vm28_vm0, %v5197_v18 }
 0x760   :  { %3854 = vmatprep.mubr.msk.f32.mxu0 %vm28_vm0, %v5199_v15 }
 0x763   :  { %3855 = vmatmul.mubr.msk.f32.gmra.mxu0 %vm28_vm0, %v5206_v24 }
 0x80c   :  { %v3847_v0 = vpop.f32.mrf.mxu0 }
 0x80d   :  { %v2957_v39 = vadd.f32 %v3847_v0, %v3539_v26 }
 0x80e   :  { %v2951_v43 = vpop.f32.mrf.mxu0 }
 0x80f   :  { %v2952_v60 = vadd.f32 %v3539_v26, %v2951_v43  ;;  %v2999_v42 = vmul.f32 0.01, %v2957_v39  ;;  %vm2991_vm1 = vcmp.gt.f32.partialorder %v2957_v39, 0.0 }
 0x811   :  { %v2998_v5 = vmul.f32 0.01, %v2952_v60  ;;  %vm2990_vm2 = vcmp.gt.f32.partialorder %v2952_v60, 0.0  ;;  %v3007_v3 = vsel %vm2991_vm1, %v2957_v39, %v2999_v42 }
 0x813   :  { %v3006_v28 = vsel %vm2990_vm2, %v2952_v60, %v2998_v5 }
 0x814   :  { %3889 = vmatprep.mubr.f32.mxu1 %v3006_v28 }
 0x815   :  { %3890 = vmatmul.mubr.f32.vlgmr.msra.gmra.mxu1 %v3007_v3 }
 0x81b   :  { %v3850_v44 = vpop.f32.mrf.mxu0 }
 0x81c   :  { %v2967_v57 = vadd.f32 %v3850_v44, %v3539_v26 }
 0x81d   :  { %v2961_v13 = vpop.f32.mrf.mxu0 }
 0x81e   :  { %v2962_v50 = vadd.f32 %v3539_v26, %v2961_v13  ;;  %v3001_v52 = vmul.f32 0.01, %v2967_v57  ;;  %vm2993_vm6 = vcmp.gt.f32.partialorder %v2967_v57, 0.0 }
 0x81f   :  { %v3853_v38 = vpop.f32.mrf.mxu0 }
 0x820   :  { %v3000_v14 = vmul.f32 0.01, %v2962_v50  ;;  %v2977_v17 = vadd.f32 %v3853_v38, %v3539_v26  ;;  %vm2992_vm3 = vcmp.gt.f32.partialorder %v2962_v50, 0.0  ;;  %v3009_v22 = vsel %vm2993_vm6, %v2967_v57, %v3001_v52 }
 0x821   :  { %v2971_v63 = vpop.f32.mrf.mxu0 }
 0x822   :  { %v2972_v11 = vadd.f32 %v3539_v26, %v2971_v63  ;;  %v3008_v27 = vsel %vm2992_vm3, %v2962_v50, %v3000_v14  ;;  %v3003_v1 = vmul.f32 0.01, %v2977_v17  ;;  %vm2995_vm10 = vcmp.gt.f32.partialorder %v2977_v17, 0.0 }
 0x823   :  { %v3856_v2 = vpop.f32.mrf.mxu0  ;;  %3892 = vmatprep.mubr.f32.mxu1 %v3008_v27 }
 0x824   :  { %v3002_v33 = vmul.f32 0.01, %v2972_v11  ;;  %v2987_v21 = vadd.f32 %v3856_v2, %v3539_v26  ;;  %3893 = vmatmul.mubr.f32.gmra.mxu1 %v3009_v22  ;;  %vm2994_vm8 = vcmp.gt.f32.partialorder %v2972_v11, 0.0  ;;  %v3011_v9 = vsel %vm2995_vm10, %v2977_v17, %v3003_v1 }
 0x825   :  { %v2981_v19 = vpop.f32.mrf.mxu0  ;;  %v4085_v22 = vmov 98  }
 0x826   :  { %v2982_v10 = vadd.f32 %v3539_v26, %v2981_v19  ;;  %v3010_v20 = vsel %vm2994_vm8, %v2972_v11, %v3002_v33  ;;  %v3005_v35 = vmul.f32 0.01, %v2987_v21  ;;  %vm2997_vm12 = vcmp.gt.f32.partialorder %v2987_v21, 0.0  ;;  %4009 = vset.pattern.permute.xlu1 %v4085_v22  ;;  %4010 = vset.pattern.permute.xlu0 %v4085_v22 }
 0x827   :  { %3895 = vmatprep.mubr.f32.mxu1 %v3010_v20 }
 0x828   :  { %v3004_v47 = vmul.f32 0.01, %v2982_v10  ;;  %3896 = vmatmul.mubr.f32.gmra.mxu1 %v3011_v9  ;;  %vm2996_vm11 = vcmp.gt.f32.partialorder %v2982_v10, 0.0  ;;  %v3013_v6 = vsel %vm2997_vm12, %v2987_v21, %v3005_v35 }
 0x82a   :  { %v3012_v48 = vsel %vm2996_vm11, %v2982_v10, %v3004_v47 }
 0x82b   :  { %3898 = vmatprep.mubr.f32.mxu1 %v3012_v48 }
 0x82c   :  { %3899 = vmatmul.mubr.f32.gmra.mxu1 %v3013_v6 }
 0x8d5   :  { %v3891_v12 = vpop.f32.mrf.mxu1 }
 0x8d6   :  { %v3107_v58 = vadd.f32 %v3891_v12, %v5216_v34 }
 0x8d7   :  { %v3101_v54 = vpop.f32.mrf.mxu1 }
 0x8d8   :  { %v5220_v46 = vadd.f32 %v3107_v58, %v5174_v25  ;;  %v3102_v51 = vadd.f32 %v5216_v34, %v3101_v54 }
 0x8da   :  { %v5224_v40 = vadd.f32 %v3102_v51, %v5172_v30  ;;  %v3151_v16 = vsel %vm28_vm0, %v5220_v46, 0.0  ;;  %v3173_v49 = vmul.f32 %v5220_v46, %v5220_v46 }
 0x8db   :  { %3152 = vadd.xlane.f32.xlu0 %v3151_v16 }
 0x8dc   :  { %v3148_v53 = vsel %vm28_vm0, %v5224_v40, 0.0  ;;  %v3183_v41 = vsel %vm28_vm0, %v3173_v49, 0.0  ;;  %v3172_v25 = vmul.f32 %v5224_v40, %v5224_v40 }
 0x8dd   :  { %3149 = vadd.xlane.f32.xlu1 %v3148_v53 }
 0x8de   :  { %v3180_v30 = vsel %vm28_vm0, %v3172_v25, 0.0 }
 0x8df   :  { %3184 = vadd.xlane.f32.xlu0 %v3183_v41 }
 0x8e3   :  { %3181 = vadd.xlane.f32.xlu0 %v3180_v30 }
 0x8e4   :  { %v3894_v36 = vpop.f32.mrf.mxu1 }
 0x8e5   :  { %v3117_v55 = vadd.f32 %v3894_v36, %v5216_v34 }
 0x8e6   :  { %v3111_v8 = vpop.f32.mrf.mxu1 }
 0x8e7   :  { %v5238_v23 = vadd.f32 %v3117_v55, %v5187_v32  ;;  %v3112_v56 = vadd.f32 %v5216_v34, %v3111_v8 }
 0x8e8   :  { %v3897_v31 = vpop.f32.mrf.mxu1 }
 0x8e9   :  { %v5242_v4 = vadd.f32 %v3112_v56, %v5181_v61  ;;  %v3127_v59 = vadd.f32 %v3897_v31, %v5216_v34  ;;  %v3157_v26 = vsel %vm28_vm0, %v5238_v23, 0.0  ;;  %v3175_v13 = vmul.f32 %v5238_v23, %v5238_v23 }
 0x8ea   :  { %3158 = vadd.xlane.f32.xlu0 %v3157_v26  ;;  %v3121_v0 = vpop.f32.mrf.mxu1 }
 0x8eb   :  { %v5248_v39 = vadd.f32 %v3127_v59, %v5197_v18  ;;  %v3122_v43 = vadd.f32 %v5216_v34, %v3121_v0  ;;  %v3154_v61 = vsel %vm28_vm0, %v5242_v4, 0.0  ;;  %v3174_v18 = vmul.f32 %v5242_v4, %v5242_v4 }
 0x8ec   :  { %v3900_v5 = vpop.f32.mrf.mxu1  ;;  %v3189_v11 = vsel %vm28_vm0, %v3175_v13, 0.0 }
 0x8ed   :  { %v5252_v32 = vadd.f32 %v3122_v43, %v5189_v29  ;;  %v3163_v60 = vsel %vm28_vm0, %v5248_v39, 0.0  ;;  %v3177_v42 = vmul.f32 %v5248_v39, %v5248_v39  ;;  %v3137_v28 = vadd.f32 %v3900_v5, %v5216_v34 }
 0x8ee   :  { %3164 = vadd.xlane.f32.xlu1 %v3163_v60  ;;  %3155 = vadd.xlane.f32.xlu0 %v3154_v61  ;;  %v3131_v57 = vpop.f32.mrf.mxu1  ;;  %v3186_v14 = vsel %vm28_vm0, %v3174_v18, 0.0 }
 0x8ef   :  { %v3195_v29 = vsel %vm28_vm0, %v3177_v42, 0.0  ;;  %v3160_v3 = vsel %vm28_vm0, %v5252_v32, 0.0  ;;  %v3176_v44 = vmul.f32 %v5252_v32, %v5252_v32  ;;  %v5271_v50 = vadd.f32 %v3137_v28, %v5206_v24 }
 0x8f0   :  { %v3132_v52 = vadd.f32 %v5216_v34, %v3131_v57 }
 0x8f1   :  { %v3192_v38 = vsel %vm28_vm0, %v3176_v44, 0.0  ;;  %v3169_v63 = vsel %vm28_vm0, %v5271_v50, 0.0 }
 0x8f2   :  { %3196 = vadd.xlane.f32.xlu1 %v3195_v29  ;;  %3161 = vadd.xlane.f32.xlu0 %v3160_v3  ;;  %v5277_v17 = vadd.f32 %v3132_v52, %v5199_v15  ;;  %v3179_v15 = vmul.f32 %v5271_v50, %v5271_v50 }
 0x8f4   :  { %v3166_v24 = vsel %vm28_vm0, %v5277_v17, 0.0  ;;  %v3178_v27 = vmul.f32 %v5277_v17, %v5277_v17  ;;  %v3201_v2 = vsel %vm28_vm0, %v3179_v15, 0.0 }
 0x8f6   :  { %3193 = vadd.xlane.f32.xlu1 %v3192_v38  ;;  %3187 = vadd.xlane.f32.xlu0 %v3186_v14  ;;  %v3198_v1 = vsel %vm28_vm0, %v3178_v27, 0.0 }
 0x8fa   :  { %3170 = vadd.xlane.f32.xlu1 %v3169_v63  ;;  %3190 = vadd.xlane.f32.xlu0 %v3189_v11 }
 0x8fe   :  { %3167 = vadd.xlane.f32.xlu1 %v3166_v24 }
 0x902   :  { %3199 = vadd.xlane.f32.xlu1 %v3198_v1 }
 0x906   :  { %3202 = vadd.xlane.f32.xlu1 %v3201_v2 }
 0x964   :  { %v3153_v33 = vpop.xlane.xlu0 %3152 }
 0x966   :  { %v3150_v10 = vpop.xlane.xlu1 %3149 }
 0x968   :  { %v3185_v21 = vpop.xlane.xlu0 %3184 }
 0x96c   :  { %v3182_v19 = vpop.xlane.xlu0 %3181 }
 0x973   :  { %v3159_v20 = vpop.xlane.xlu0 %3158 }
 0x977   :  { %v3156_v35 = vpop.xlane.xlu0 %3155  ;;  %v3165_v9 = vpop.xlane.xlu1 %3164 }
 0x978   :  { %v3205_v47 = vadd.f32 %v3165_v9, %v3153_v33 }
 0x97a   :  { %v3213_v48 = vmul.f32 0.015625, %v3205_v47 }
 0x97b   :  { %v3162_v6 = vpop.xlane.xlu0 %3161  ;;  %v3197_v12 = vpop.xlane.xlu1 %3196 }
 0x97c   :  { %v3204_v58 = vadd.f32 %v3162_v6, %v3150_v10  ;;  %v3209_v54 = vadd.f32 %v3197_v12, %v3185_v21  ;;  %v3221_v51 = vmul.f32 %v3213_v48, %v3213_v48 }
 0x97e   :  { %v3212_v16 = vmul.f32 0.015625, %v3204_v58  ;;  %v3217_v49 = vmul.f32 0.015625, %v3209_v54 }
 0x97f   :  { %v3194_v53 = vpop.xlane.xlu1 %3193  ;;  %v3188_v0 = vpop.xlane.xlu0 %3187 }
 0x980   :  { %v3225_v41 = vsub.f32 %v3217_v49, %v3221_v51  ;;  %v3208_v25 = vadd.f32 %v3194_v53, %v3182_v19  ;;  %v3220_v30 = vmul.f32 %v3212_v16, %v3212_v16 }
 0x982   :  { %v3229_v36 = vadd.f32 1e-05, %v3225_v41  ;;  %v3216_v55 = vmul.f32 0.015625, %v3208_v25 }
 0x983   :  { %v3171_v8 = vpop.xlane.xlu1 %3170  ;;  %v3191_v29 = vpop.xlane.xlu0 %3190 }
 0x984   :  { %4053 = vrsqrt.f32 %v3229_v36  ;;  %v3224_v56 = vsub.f32 %v3216_v55, %v3220_v30  ;;  %v3207_v43 = vadd.f32 %v3171_v8, %v3159_v20 }
 0x986   :  { %v3228_v31 = vadd.f32 1e-05, %v3224_v56  ;;  %v3215_v5 = vmul.f32 0.015625, %v3207_v43 }
 0x987   :  { %v3168_v59 = vpop.xlane.xlu1 %3167 }
 0x988   :  { %4055 = vrsqrt.f32 %v3228_v31  ;;  %v3206_v26 = vadd.f32 %v3168_v59, %v3156_v35  ;;  %v3223_v52 = vmul.f32 %v3215_v5, %v3215_v5  ;;  %v4086_v35 = vmov 99  }
 0x98a   :  { %v3214_v60 = vmul.f32 0.015625, %v3206_v26 }
 0x98b   :  { %v3200_v61 = vpop.xlane.xlu1 %3199 }
 0x98c   :  { %v3210_v42 = vadd.f32 %v3200_v61, %v3188_v0  ;;  %v3222_v18 = vmul.f32 %v3214_v60, %v3214_v60 }
 0x98e   :  { %v3218_v28 = vmul.f32 0.015625, %v3210_v42 }
 0x98f   :  { %v3203_v3 = vpop.xlane.xlu1 %3202 }
 0x990   :  { %v3226_v44 = vsub.f32 %v3218_v28, %v3222_v18  ;;  %v3211_v57 = vadd.f32 %v3203_v3, %v3191_v29 }
 0x991   :  { %v4054_v13 = vpop.eup %4053 }
 0x992   :  { %v3230_v38 = vadd.f32 1e-05, %v3226_v44  ;;  %v3219_v14 = vmul.f32 0.015625, %v3211_v57  ;;  %v3237_v63 = vmul.f32 %v4054_v13, %v5084_v37 }
 0x994   :  { %4057 = vrsqrt.f32 %v3230_v38  ;;  %v3227_v11 = vsub.f32 %v3219_v14, %v3223_v52  ;;  %v3241_v24 = vmul.f32 %v3237_v63, %v3213_v48 }
 0x995   :  { %v4056_v27 = vpop.eup %4055 }
 0x996   :  { %v3231_v1 = vadd.f32 1e-05, %v3227_v11  ;;  %3250 = vrot.lane.b32.xlu1 %v3241_v24, %s4083_s30  ;;  %v3236_v15 = vmul.f32 %v4056_v27, %v5090_v62 }
 0x998   :  { %4059 = vrsqrt.f32 %v3231_v1  ;;  %v3240_v2 = vmul.f32 %v3236_v15, %v3212_v16 }
 0x99a   :  { %3248 = vrot.lane.b32.xlu0 %v3240_v2, %s4083_s30 }
 0x9a1   :  { %v4058_v22 = vpop.eup %4057 }
 0x9a2   :  { %v3238_v33 = vmul.f32 %v4058_v22, %v5098_v7 }
 0x9a4   :  { %v3242_v21 = vmul.f32 %v3238_v33, %v3214_v60 }
 0x9a5   :  { %v4060_v19 = vpop.eup %4059 }
 0x9a6   :  { %3252 = vrot.lane.b32.xlu1 %v3242_v21, %s4083_s30  ;;  %v3239_v10 = vmul.f32 %v4060_v19, %v5104_v45 }
 0x9a8   :  { %v3243_v20 = vmul.f32 %v3239_v10, %v3215_v5 }
 0x9aa   :  { %3266 = vperm.xlu1 %4009, %v3236_v15   ;;  %3254 = vrot.lane.b32.xlu0 %v3243_v20, %s4083_s30 }
 0x9ae   :  { %3330 = vrot.lane.b32.xlu1 %v5104_v45, %s4072_s25  ;;  %3271 = vperm.xlu0 %4010, %v3237_v63  }
 0x9b2   :  { %3276 = vperm.xlu1 %4009, %v3238_v33   ;;  %3281 = vperm.xlu0 %4010, %v3239_v10  }
 0x9b6   :  { %3328 = vrot.lane.b32.xlu1 %v5098_v7, %s4072_s25  ;;  %4011 = vset.pattern.permute.xlu0 %v4086_v35 }
 0x9b7   :  { %4012 = vset.pattern.permute.xlu1 %v4086_v35 }
 0x9ba   :  { %3326 = vrot.lane.b32.xlu1 %v5084_v37, %s4072_s25 }
 0xa08   :  { %v3251_v9 = vpop.permute.xlu1 %3250 }
 0xa09   :  { %v3261_v47 = vsub.f32 %v5084_v37, %v3251_v9 }
 0xa0b   :  { %3299 = vperm.xlu0 %4011, %v3261_v47  }
 0xa0c   :  { %v3249_v48 = vpop.permute.xlu0 %3248 }
 0xa0d   :  { %v3260_v6 = vsub.f32 %v5090_v62, %v3249_v48 }
 0xa0f   :  { %3294 = vperm.xlu1 %4012, %v3260_v6  }
 0xa18   :  { %v3253_v12 = vpop.permute.xlu1 %3252 }
 0xa19   :  { %v3262_v58 = vsub.f32 %v5098_v7, %v3253_v12 }
 0xa1b   :  { %3304 = vperm.xlu1 %4012, %v3262_v58  }
 0xa1c   :  { %v3255_v54 = vpop.permute.xlu0 %3254 }
 0xa1d   :  { %v3263_v51 = vsub.f32 %v5104_v45, %v3255_v54 }
 0xa1f   :  { %3309 = vperm.xlu0 %4011, %v3263_v51   ;;  %3324 = vrot.lane.b32.xlu1 %v5090_v62, %s4072_s25 }
 0xa23   :  { %3337 = vrot.lane.b32.xlu1 %v5216_v34, %s4069_s23 }
 0xa25   :  { %v3267_v37 = vpop.permute.xlu1 %3266 }
 0xa26   :  { %v3284_v45 = vmul.f32 %v3267_v37, %v5224_v40  ;;  %v3288_v0 = vmul.f32 %v3267_v37, %v5252_v32 }
 0xa29   :  { %v3331_v16 = vpop.permute.xlu1 %3330  ;;  %v3272_v62 = vpop.permute.xlu0 %3271 }
 0xa2a   :  { %3901 = vmatprep.subr.mxu0 %v3331_v16  ;;  %v3285_v55 = vmul.f32 %v3272_v62, %v5220_v46  ;;  %v3289_v46 = vmul.f32 %v3272_v62, %v5248_v39 }
 0xa2b   :  { %3902 = vmatpush3.msra.mxu0 %v3331_v16 }
 0xa2d   :  { %v3277_v49 = vpop.permute.xlu1 %3276  ;;  %v3282_v30 = vpop.permute.xlu0 %3281 }
 0xa2e   :  { %v3286_v8 = vmul.f32 %v3277_v49, %v5242_v4  ;;  %v3287_v40 = vmul.f32 %v3282_v30, %v5238_v23  ;;  %v3290_v4 = vmul.f32 %v3277_v49, %v5277_v17  ;;  %v3291_v23 = vmul.f32 %v3282_v30, %v5271_v50 }
 0xa31   :  { %v3329_v53 = vpop.permute.xlu1 %3328 }
 0xa32   :  { %3903 = vmatprep.subr.mxu0 %v3329_v53 }
 0xa33   :  { %3904 = vmatpush3.msra.mxu0 %v3329_v53 }
 0xa35   :  { %v3327_v7 = vpop.permute.xlu1 %3326 }
 0xa36   :  { %3905 = vmatprep.subr.mxu0 %v3327_v7 }
 0xa37   :  { %3906 = vmatpush3.msra.mxu0 %v3327_v7 }
 0xa86   :  { %v3300_v36 = vpop.permute.xlu0 %3299 }
 0xa87   :  { %v3313_v31 = vadd.f32 %v3300_v36, %v3285_v55  ;;  %v3317_v61 = vadd.f32 %v3300_v36, %v3289_v46 }
 0xa8a   :  { %v3295_v41 = vpop.permute.xlu1 %3294 }
 0xa8b   :  { %v3312_v25 = vadd.f32 %v3295_v41, %v3284_v45  ;;  %v3316_v60 = vadd.f32 %v3295_v41, %v3288_v0 }
 0xa8d   :  { %3909 = vmatprep.mubr.msk.f32.mxu0 %vm28_vm0, %v3312_v25 }
 0xa96   :  { %v3305_v34 = vpop.permute.xlu1 %3304 }
 0xa97   :  { %v3314_v59 = vadd.f32 %v3305_v34, %v3286_v8  ;;  %v3318_v42 = vadd.f32 %v3305_v34, %v3290_v4 }
 0xa9a   :  { %v3325_v56 = vpop.permute.xlu1 %3324  ;;  %v3310_v26 = vpop.permute.xlu0 %3309 }
 0xa9b   :  { %3907 = vmatprep.subr.mxu0 %v3325_v56  ;;  %v3315_v43 = vadd.f32 %v3310_v26, %v3287_v40  ;;  %v3319_v32 = vadd.f32 %v3310_v26, %v3291_v23 }
 0xa9c   :  { %3908 = vmatpush3.msra.mxu0 %v3325_v56 }
 0xa9d   :  { %3910 = vmatmul.mubr.msk.f32.vlgmr.msra.gmra.mxu0 %vm28_vm0, %v3313_v31 }
 0xa9e   :  { %3912 = vmatprep.mubr.msk.f32.mxu0 %vm28_vm0, %v3314_v59  ;;  %v3338_v5 = vpop.permute.xlu1 %3337 }
 0xaa1   :  { %3913 = vmatmul.mubr.msk.f32.gmra.mxu0 %vm28_vm0, %v3315_v43 }
 0xaa2   :  { %3915 = vmatprep.mubr.msk.f32.mxu0 %vm28_vm0, %v3316_v60 }
 0xaa5   :  { %3916 = vmatmul.mubr.msk.f32.gmra.mxu0 %vm28_vm0, %v3317_v61 }
 0xaa6   :  { %3918 = vmatprep.mubr.msk.f32.mxu0 %vm28_vm0, %v3318_v42 }
 0xaa9   :  { %3919 = vmatmul.mubr.msk.f32.gmra.mxu0 %vm28_vm0, %v3319_v32 }
 0xb5d   :  { %v3911_v18 = vpop.f32.mrf.mxu0 }
 0xb5e   :  { %v3436_v39 = vadd.f32 %v3911_v18, %v3338_v5 }
 0xb5f   :  { %v3430_v28 = vpop.f32.mrf.mxu0 }
 0xb60   :  { %3470 = vst.msk [vmem:[%s5362_s2 + $0x8] sm:$0xff] %vm28_vm0, %v3436_v39  ;;  %v3431_v17 = vadd.f32 %v3430_v28, %v3338_v5 }
 0xb61   :  { %v3914_v29 = vpop.f32.mrf.mxu0 }
 0xb62   :  { %3469 = vst.msk [vmem:[%s5362_s2] sm:$0xff] %vm28_vm0, %v3431_v17  ;;  %v3446_v50 = vadd.f32 %v3914_v29, %v3338_v5 }
 0xb63   :  { %v3440_v3 = vpop.f32.mrf.mxu0 }
 0xb64   :  { %3472 = vst.msk [vmem:[%s5362_s2 + $0x18] sm:$0xff] %vm28_vm0, %v3446_v50  ;;  %v3441_v44 = vadd.f32 %v3440_v3, %v3338_v5 }
 0xb65   :  { %v3917_v57 = vpop.f32.mrf.mxu0 }
 0xb66   :  { %3471 = vst.msk [vmem:[%s5362_s2 + $0x10] sm:$0xff] %vm28_vm0, %v3441_v44  ;;  %v3456_v13 = vadd.f32 %v3917_v57, %v3338_v5 }
 0xb67   :  { %v3450_v52 = vpop.f32.mrf.mxu0 }
 0xb68   :  { %3474 = vst.msk [vmem:[%s5362_s2 + $0x28] sm:$0xff] %vm28_vm0, %v3456_v13  ;;  %v3451_v38 = vadd.f32 %v3450_v52, %v3338_v5 }
 0xb69   :  { %v3920_v14 = vpop.f32.mrf.mxu0 }
 0xb6a   :  { %3473 = vst.msk [vmem:[%s5362_s2 + $0x20] sm:$0xff] %vm28_vm0, %v3451_v38  ;;  %v3466_v63 = vadd.f32 %v3920_v14, %v3338_v5 }
 0xb6b   :  { %v3460_v11 = vpop.f32.mrf.mxu0 }
 0xb6c   :  { %3476 = vst.msk [vmem:[%s5362_s2 + $0x38] sm:$0xff] %vm28_vm0, %v3466_v63  ;;  %v3461_v24 = vadd.f32 %v3460_v11, %v3338_v5 }
 0xb6e   :  { %3475 = vst.msk [vmem:[%s5362_s2 + $0x30] sm:$0xff] %vm28_vm0, %v3461_v24 }

</bundles_post_ra>
